<compile_context>
chip_gen: v6e
topology: v6e:2x2x1
jax: 0.10.0
libtpu: 0.0.40
codegen_flags: <defaults>
</compile_context>

<pallas_src>
import functools

import jax
import jax.numpy as jnp
from jax.experimental import pallas as pl
from jax.experimental.pallas import tpu as pltpu

LN_EPS = 1e-5
NUM_BLOCKS = 4


def _round_up(x, m):
    return ((x + m - 1) // m) * m


def _mish(x):
    # mish(x) = x * tanh(softplus(x)) with a single exp:
    #   t = exp(-|x|)
    #   x >= 0: tanh(softplus(x)) = (2t + 1)   / (2t^2 + 2t + 1)
    #   x <  0: tanh(softplus(x)) = (t^2 + 2t) / (t^2 + 2t + 2)
    # exp(-|x|) never overflows; everything else is cheap VPU work.
    t = jnp.exp(-jnp.abs(x))
    t2 = t * t
    pos = x >= 0.0
    num = jnp.where(pos, 2.0 * t + 1.0, t2 + 2.0 * t)
    den = jnp.where(pos, 2.0 * t2 + 2.0 * t + 1.0, t2 + 2.0 * t + 2.0)
    return x * num / den


def noise_predictor_kernel(
    x_ref,         # (TB, state_dim)    noisy_s_next tile
    c_ref,         # (TB, cond_dim)     condition tile
    wx_ref,        # (state_dim, 2H)    x rows of the fused input projection
    wc_ref,        # (cond_dim, 2H)     condition rows of the fused projection
    b_fused_ref,   # (1, 2H)
    blk_w_ref,     # (4, H, 2H)  [W | row_mean(W) broadcast over 128 lanes]
    blk_b_ref,     # (4, 1, 2H)  [b | mean(b) broadcast]
    blk_g_ref,     # (4, 1, H)   LayerNorm gamma
    blk_beta_ref,  # (4, 1, H)   LayerNorm beta
    w_out_ref,     # (H, out_pad)   out_pad = round_up(state_dim, 128)
    b_out_ref,     # (1, out_pad)
    o_ref,         # (TB, out_pad)
):
    H = blk_g_ref.shape[-1]

    # Fused input projection without any wrapper-side concat: two K-push groups
    # accumulate into one MXU result producing [input_proj(x)+cond | cond].
    proj = (jnp.dot(x_ref[...], wx_ref[...], preferred_element_type=jnp.float32)
            + jnp.dot(c_ref[...], wc_ref[...], preferred_element_type=jnp.float32)
            + b_fused_ref[...])
    h = proj[:, :H]      # = input_proj(x) + cond_proj(condition)
    cond = proj[:, H:]   # = cond_proj(condition), reused by every residual add

    inv_h = 1.0 / H
    for i in range(NUM_BLOCKS):
        y_full = jnp.dot(h, blk_w_ref[i],
                         preferred_element_type=jnp.float32) + blk_b_ref[i]
        y = y_full[:, :H]
        m1 = y_full[:, H:]               # per-row mean, already lane-broadcast
        diff = y - m1
        # centered variance: numerically robust, single serial XLU reduce
        var = jnp.sum(diff * diff, axis=-1, keepdims=True) * inv_h
        scale = jax.lax.rsqrt(var + LN_EPS) * blk_g_ref[i]   # gamma folded in
        y_n = diff * scale + blk_beta_ref[i]
        h = _mish(y_n) + cond

    # lane-dense (padded to a multiple of 128 columns) output store
    o_ref[...] = jnp.dot(h, w_out_ref[...],
                         preferred_element_type=jnp.float32) + b_out_ref[...]


def prepare_fused_params(params):
    """One-time weight re-layout; call this OUTSIDE the denoising loop so the
    fused / padded weights are built once and stay resident across calls."""
    w_in, b_in = params["w_in"], params["b_in"]     # (S,H), (1,H)
    w_c, b_c = params["w_c"], params["b_c"]         # (C,H), (1,H)
    S, H = w_in.shape

    # x @ wx + c @ wc + b_fused == [input_proj(x) + cond_proj(c) | cond_proj(c)]
    wx = jnp.concatenate([w_in, jnp.zeros((S, H), jnp.float32)], axis=1)  # (S,2H)
    wc = jnp.concatenate([w_c, w_c], axis=1)                              # (C,2H)
    b_fused = jnp.concatenate([b_in + b_c, b_c], axis=1)                  # (1,2H)

    # Fold the LayerNorm mean into each block matmul: columns H..2H-1 all hold
    # row_mean(W), so the matmul's second half is the per-row mean already
    # broadcast across all H lanes (drops one XLU reduce+broadcast per block).
    w = params["blk_w"]                                                   # (4,H,H)
    mean_col = jnp.broadcast_to(jnp.mean(w, axis=-1, keepdims=True), w.shape)
    blk_w = jnp.concatenate([w, mean_col], axis=-1)                       # (4,H,2H)
    b = params["blk_b"]                                                   # (4,1,H)
    b_mean = jnp.broadcast_to(jnp.mean(b, axis=-1, keepdims=True), b.shape)
    blk_b = jnp.concatenate([b, b_mean], axis=-1)                         # (4,1,2H)

    # pad the output projection to a lane-dense multiple of 128 columns
    out_dim = params["w_out"].shape[1]
    out_pad = _round_up(out_dim, 128)
    w_out = jnp.pad(params["w_out"], ((0, 0), (0, out_pad - out_dim)))
    b_out = jnp.pad(params["b_out"], ((0, 0), (0, out_pad - out_dim)))

    return {
        "wx": wx, "wc": wc, "b_fused": b_fused,
        "blk_w": blk_w, "blk_b": blk_b,
        "blk_g": params["blk_g"], "blk_beta": params["blk_beta"],
        "w_out": w_out, "b_out": b_out,
    }


@functools.partial(jax.jit, static_argnames=("max_block_batch",))
def conditional_noise_predictor_padded(noisy_s_next, condition, fused_params,
                                       *, max_block_batch=256):
    """Returns the padded (b_pad, out_pad) output slab.  Slice
    [:B, :state_dim] at the consumer (keeps the serial latency path to a single
    pallas_call; padding only materializes when B doesn't fit the tile)."""
    fp = fused_params
    B, state_dim = noisy_s_next.shape
    cond_dim = condition.shape[-1]
    H = fp["blk_g"].shape[-1]
    out_pad = fp["w_out"].shape[-1]

    # Balanced batch tiling:
    #  - tiles never leave a nearly-empty trailing tile (B=300 -> 2x152, not 2x256)
    #  - B >= 16 always gives >=2 grid steps so the "parallel" axis can shard
    #    across both v7x TensorCores (one extra ~0.35us step on v5e/v6e: noise).
    num_tiles = pl.cdiv(B, max_block_batch)
    if B >= 16:
        num_tiles = max(num_tiles, 2)
    tb = _round_up(-(-B // num_tiles), 8)
    b_pad = num_tiles * tb
    if b_pad != B:
        noisy_s_next = jnp.pad(noisy_s_next, ((0, b_pad - B), (0, 0)))
        condition = jnp.pad(condition, ((0, b_pad - B), (0, 0)))
    grid = (num_tiles,)

    batched2 = lambda i: (i, 0)
    fixed2 = lambda i: (0, 0)
    fixed3 = lambda i: (0, 0, 0)

    # advisory cost hint so XLA schedules/overlaps the surrounding small HLOs
    flops = 2 * b_pad * ((state_dim + cond_dim) * 2 * H
                         + NUM_BLOCKS * H * 2 * H + H * out_pad)
    transcendentals = NUM_BLOCKS * b_pad * (H + 1)   # one exp per mish elt + rsqrt
    param_bytes = 4 * sum(int(fp[k].size) for k in
                          ("wx", "wc", "b_fused", "blk_w", "blk_b",
                           "blk_g", "blk_beta", "w_out", "b_out"))
    act_bytes = 4 * (b_pad * (state_dim + cond_dim) + b_pad * out_pad)
    cost = pl.CostEstimate(flops=flops, transcendentals=transcendentals,
                           bytes_accessed=param_bytes + act_bytes)

    out = pl.pallas_call(
        noise_predictor_kernel,
        out_shape=jax.ShapeDtypeStruct((b_pad, out_pad), jnp.float32),
        grid=grid,
        in_specs=[
            pl.BlockSpec((tb, state_dim), batched2),
            pl.BlockSpec((tb, cond_dim), batched2),
            pl.BlockSpec((state_dim, 2 * H), fixed2),
            pl.BlockSpec((cond_dim, 2 * H), fixed2),
            pl.BlockSpec((1, 2 * H), fixed2),
            pl.BlockSpec((NUM_BLOCKS, H, 2 * H), fixed3),
            pl.BlockSpec((NUM_BLOCKS, 1, 2 * H), fixed3),
            pl.BlockSpec((NUM_BLOCKS, 1, H), fixed3),
            pl.BlockSpec((NUM_BLOCKS, 1, H), fixed3),
            pl.BlockSpec((H, out_pad), fixed2),
            pl.BlockSpec((1, out_pad), fixed2),
        ],
        out_specs=pl.BlockSpec((tb, out_pad), batched2),
        compiler_params=pltpu.CompilerParams(
            dimension_semantics=("parallel",)),
        cost_estimate=cost,
    )(noisy_s_next, condition, fp["wx"], fp["wc"], fp["b_fused"],
      fp["blk_w"], fp["blk_b"], fp["blk_g"], fp["blk_beta"],
      fp["w_out"], fp["b_out"])

    return out


def conditional_noise_predictor(noisy_s_next, condition, fused_params):
    """Convenience wrapper with exact module output shape (slices the slab)."""
    B, state_dim = noisy_s_next.shape
    out = conditional_noise_predictor_padded(noisy_s_next, condition, fused_params)
    return out[:B, :state_dim]


def init_params(key, state_dim, action_dim, time_dim, hidden_dim):
    cond_dim = state_dim + action_dim + time_dim
    ks = jax.random.split(key, 8)
    scale = 0.05
    return {
        "w_in": scale * jax.random.normal(ks[0], (state_dim, hidden_dim), jnp.float32),
        "b_in": scale * jax.random.normal(ks[1], (1, hidden_dim), jnp.float32),
        "w_c": scale * jax.random.normal(ks[2], (cond_dim, hidden_dim), jnp.float32),
        "b_c": scale * jax.random.normal(ks[3], (1, hidden_dim), jnp.float32),
        "blk_w": scale * jax.random.normal(ks[4], (NUM_BLOCKS, hidden_dim, hidden_dim), jnp.float32),
        "blk_b": scale * jax.random.normal(ks[5], (NUM_BLOCKS, 1, hidden_dim), jnp.float32),
        "blk_g": jnp.ones((NUM_BLOCKS, 1, hidden_dim), jnp.float32),      # LayerNorm weight = 1
        "blk_beta": jnp.zeros((NUM_BLOCKS, 1, hidden_dim), jnp.float32),  # LayerNorm bias = 0
        "w_out": scale * jax.random.normal(ks[6], (hidden_dim, state_dim), jnp.float32),
        "b_out": scale * jax.random.normal(ks[7], (1, state_dim), jnp.float32),
    }


def reference_forward(noisy_s_next, condition, params):
    """Pure-JAX reference mirroring the PyTorch module exactly."""
    x = noisy_s_next @ params["w_in"] + params["b_in"]
    cond = condition @ params["w_c"] + params["b_c"]
    x = x + cond
    for i in range(NUM_BLOCKS):
        y = x @ params["blk_w"][i] + params["blk_b"][i]
        mean = jnp.mean(y, axis=-1, keepdims=True)
        var = jnp.mean((y - mean) ** 2, axis=-1, keepdims=True)
        y = (y - mean) / jnp.sqrt(var + LN_EPS)
        y = y * params["blk_g"][i] + params["blk_beta"][i]
        y = y * jnp.tanh(jax.nn.softplus(y))  # Mish
        x = y + cond
    return x @ params["w_out"] + params["b_out"]


if __name__ == "__main__":
    # small shapes consistent with the module's forward
    batch = 8
    state_dim = 16
    action_dim = 8
    time_dim = 16
    hidden_dim = 128
    cond_dim = state_dim + action_dim + time_dim

    key = jax.random.PRNGKey(0)
    k_x, k_c, k_p = jax.random.split(key, 3)
    noisy_s_next = jax.random.normal(k_x, (batch, state_dim), jnp.float32)
    condition = jax.random.normal(k_c, (batch, cond_dim), jnp.float32)
    params = init_params(k_p, state_dim, action_dim, time_dim, hidden_dim)

    # one-time fusion/padding of the weights (kept resident across calls)
    fused = prepare_fused_params(params)

    # single forward: jitted call returns the padded slab; slice at the consumer
    out_padded = conditional_noise_predictor_padded(noisy_s_next, condition, fused)
    out_padded = jax.block_until_ready(out_padded)
    out = out_padded[:batch, :state_dim]

    ref = reference_forward(noisy_s_next, condition, params)
    assert out.shape == (batch, state_dim)
    max_err = float(jnp.max(jnp.abs(out - ref)))
    assert jnp.allclose(out, ref, atol=1e-4, rtol=1e-4), (
        f"mismatch vs JAX reference (max abs err = {max_err:.3e})")

    # Recommended denoising-loop usage: ONE jit + lax.scan around the kernel so
    # per-step dispatch overhead and weight DMAs amortize across all T steps.
    @jax.jit
    def denoise_demo(s0):
        def step(s, _):
            eps = conditional_noise_predictor_padded(s, condition, fused)[:, :state_dim]
            return s - 0.1 * eps, None
        s_final, _ = jax.lax.scan(step, s0, None, length=4)
        return s_final

    s_final = jax.block_until_ready(denoise_demo(noisy_s_next))
    assert bool(jnp.all(jnp.isfinite(s_final)))

    print("KERNEL_OK")
</pallas_src>

<mosaic_0001>
module attributes {stable_mosaic.version = 11 : i64} {
  func.func @noise_predictor_kernel(%arg0: i32, %arg1: memref<8x16xf32, #tpu.memory_space<vmem>>, %arg2: memref<8x40xf32, #tpu.memory_space<vmem>>, %arg3: memref<16x256xf32, #tpu.memory_space<vmem>>, %arg4: memref<40x256xf32, #tpu.memory_space<vmem>>, %arg5: memref<1x256xf32, #tpu.memory_space<vmem>>, %arg6: memref<4x128x256xf32, #tpu.memory_space<vmem>>, %arg7: memref<4x1x256xf32, #tpu.memory_space<vmem>>, %arg8: memref<4x1x128xf32, #tpu.memory_space<vmem>>, %arg9: memref<4x1x128xf32, #tpu.memory_space<vmem>>, %arg10: memref<128x128xf32, #tpu.memory_space<vmem>>, %arg11: memref<1x128xf32, #tpu.memory_space<vmem>>, %arg12: memref<8x128xf32, #tpu.memory_space<vmem>>) attributes {dimension_semantics = [#tpu.dimension_semantics<parallel>], iteration_bounds = array<i64: 1>, scalar_prefetch = 0 : i64, scratch_operands = 0 : i64, tpu.core_type = #tpu.core_type<tc>, window_params = [{transform_indices = @transform_0, window_bounds = array<i64: 8, 16>}, {transform_indices = @transform_1, window_bounds = array<i64: 8, 40>}, {pipeline_mode = #tpu.pipeline_mode<synchronous>, transform_indices = @transform_2, window_bounds = array<i64: 16, 256>}, {pipeline_mode = #tpu.pipeline_mode<synchronous>, transform_indices = @transform_3, window_bounds = array<i64: 40, 256>}, {pipeline_mode = #tpu.pipeline_mode<synchronous>, transform_indices = @transform_4, window_bounds = array<i64: 1, 256>}, {pipeline_mode = #tpu.pipeline_mode<synchronous>, transform_indices = @transform_5, window_bounds = array<i64: 4, 128, 256>}, {pipeline_mode = #tpu.pipeline_mode<synchronous>, transform_indices = @transform_6, window_bounds = array<i64: 4, 1, 256>}, {pipeline_mode = #tpu.pipeline_mode<synchronous>, transform_indices = @transform_7, window_bounds = array<i64: 4, 1, 128>}, {pipeline_mode = #tpu.pipeline_mode<synchronous>, transform_indices = @transform_8, window_bounds = array<i64: 4, 1, 128>}, {pipeline_mode = #tpu.pipeline_mode<synchronous>, transform_indices = @transform_9, window_bounds = array<i64: 128, 128>}, {pipeline_mode = #tpu.pipeline_mode<synchronous>, transform_indices = @transform_10, window_bounds = array<i64: 1, 128>}, {transform_indices = @transform_11, window_bounds = array<i64: 8, 128>}]} {
    %c0 = arith.constant 0 : index
    %c0_0 = arith.constant 0 : index
    %0 = vector.load %arg1[%c0, %c0_0] : memref<8x16xf32, #tpu.memory_space<vmem>>, vector<8x16xf32>
    %c0_1 = arith.constant 0 : index
    %c0_2 = arith.constant 0 : index
    %1 = vector.load %arg3[%c0_1, %c0_2] : memref<16x256xf32, #tpu.memory_space<vmem>>, vector<16x256xf32>
    %cst = arith.constant dense<0.000000e+00> : vector<8x256xf32>
    %2 = tpu.matmul %0, %1, %cst {dimension_numbers = #tpu.dot_dimension_numbers<[1], [0], [0], [1], [0, 0, 1, 1], [], []>} : vector<8x16xf32>, vector<16x256xf32>, vector<8x256xf32> -> vector<8x256xf32>
    %c0_3 = arith.constant 0 : index
    %c0_4 = arith.constant 0 : index
    %3 = vector.load %arg2[%c0_3, %c0_4] : memref<8x40xf32, #tpu.memory_space<vmem>>, vector<8x40xf32>
    %c0_5 = arith.constant 0 : index
    %c0_6 = arith.constant 0 : index
    %4 = vector.load %arg4[%c0_5, %c0_6] : memref<40x256xf32, #tpu.memory_space<vmem>>, vector<40x256xf32>
    %cst_7 = arith.constant dense<0.000000e+00> : vector<8x256xf32>
    %5 = tpu.matmul %3, %4, %cst_7 {dimension_numbers = #tpu.dot_dimension_numbers<[1], [0], [0], [1], [0, 0, 1, 1], [], []>} : vector<8x40xf32>, vector<40x256xf32>, vector<8x256xf32> -> vector<8x256xf32>
    %6 = arith.addf %2, %5 : vector<8x256xf32>
    %c0_8 = arith.constant 0 : index
    %c0_9 = arith.constant 0 : index
    %7 = vector.load %arg5[%c0_8, %c0_9] : memref<1x256xf32, #tpu.memory_space<vmem>>, vector<1x256xf32>
    %8 = vector.broadcast %7 : vector<1x256xf32> to vector<8x256xf32>
    %9 = arith.addf %6, %8 : vector<8x256xf32>
    %10 = vector.extract_strided_slice %9 {offsets = [0, 0], sizes = [8, 128], strides = [1, 1]} : vector<8x256xf32> to vector<8x128xf32>
    %11 = vector.extract_strided_slice %9 {offsets = [0, 128], sizes = [8, 128], strides = [1, 1]} : vector<8x256xf32> to vector<8x128xf32>
    %c0_10 = arith.constant 0 : index
    %c0_11 = arith.constant 0 : index
    %c0_12 = arith.constant 0 : index
    %12 = vector.load %arg6[%c0_10, %c0_11, %c0_12] : memref<4x128x256xf32, #tpu.memory_space<vmem>>, vector<1x128x256xf32>
    %13 = vector.shape_cast %12 : vector<1x128x256xf32> to vector<128x256xf32>
    %cst_13 = arith.constant dense<0.000000e+00> : vector<8x256xf32>
    %14 = tpu.matmul %10, %13, %cst_13 {dimension_numbers = #tpu.dot_dimension_numbers<[1], [0], [0], [1], [0, 0, 1, 1], [], []>} : vector<8x128xf32>, vector<128x256xf32>, vector<8x256xf32> -> vector<8x256xf32>
    %c0_14 = arith.constant 0 : index
    %c0_15 = arith.constant 0 : index
    %c0_16 = arith.constant 0 : index
    %15 = vector.load %arg7[%c0_14, %c0_15, %c0_16] : memref<4x1x256xf32, #tpu.memory_space<vmem>>, vector<1x1x256xf32>
    %16 = vector.shape_cast %15 : vector<1x1x256xf32> to vector<1x256xf32>
    %17 = vector.broadcast %16 : vector<1x256xf32> to vector<8x256xf32>
    %18 = arith.addf %14, %17 : vector<8x256xf32>
    %19 = vector.extract_strided_slice %18 {offsets = [0, 0], sizes = [8, 128], strides = [1, 1]} : vector<8x256xf32> to vector<8x128xf32>
    %20 = vector.extract_strided_slice %18 {offsets = [0, 128], sizes = [8, 128], strides = [1, 1]} : vector<8x256xf32> to vector<8x128xf32>
    %21 = arith.subf %19, %20 : vector<8x128xf32>
    %22 = arith.mulf %21, %21 : vector<8x128xf32>
    %cst_17 = arith.constant dense<0.000000e+00> : vector<8xf32>
    %23 = vector.multi_reduction <add>, %22, %cst_17 [1] : vector<8x128xf32> to vector<8xf32>
    %24 = vector.shape_cast %23 : vector<8xf32> to vector<8x1xf32>
    %cst_18 = arith.constant 7.812500e-03 : f32
    %25 = vector.broadcast %cst_18 : f32 to vector<8x1xf32>
    %26 = arith.mulf %24, %25 : vector<8x1xf32>
    %cst_19 = arith.constant 9.99999974E-6 : f32
    %27 = vector.broadcast %cst_19 : f32 to vector<8x1xf32>
    %28 = arith.addf %26, %27 : vector<8x1xf32>
    %29 = math.rsqrt %28 : vector<8x1xf32>
    %c0_20 = arith.constant 0 : index
    %c0_21 = arith.constant 0 : index
    %c0_22 = arith.constant 0 : index
    %30 = vector.load %arg8[%c0_20, %c0_21, %c0_22] : memref<4x1x128xf32, #tpu.memory_space<vmem>>, vector<1x1x128xf32>
    %31 = vector.shape_cast %30 : vector<1x1x128xf32> to vector<1x128xf32>
    %32 = vector.broadcast %29 : vector<8x1xf32> to vector<8x128xf32>
    %33 = vector.broadcast %31 : vector<1x128xf32> to vector<8x128xf32>
    %34 = arith.mulf %32, %33 : vector<8x128xf32>
    %35 = arith.mulf %21, %34 : vector<8x128xf32>
    %c0_23 = arith.constant 0 : index
    %c0_24 = arith.constant 0 : index
    %c0_25 = arith.constant 0 : index
    %36 = vector.load %arg9[%c0_23, %c0_24, %c0_25] : memref<4x1x128xf32, #tpu.memory_space<vmem>>, vector<1x1x128xf32>
    %37 = vector.shape_cast %36 : vector<1x1x128xf32> to vector<1x128xf32>
    %38 = vector.broadcast %37 : vector<1x128xf32> to vector<8x128xf32>
    %39 = arith.addf %35, %38 : vector<8x128xf32>
    %40 = math.absf %39 : vector<8x128xf32>
    %cst_26 = arith.constant 0.000000e+00 : f32
    %41 = vector.broadcast %cst_26 : f32 to vector<8x128xf32>
    %42 = arith.subf %41, %40 : vector<8x128xf32>
    %43 = math.exp %42 : vector<8x128xf32>
    %44 = arith.mulf %43, %43 : vector<8x128xf32>
    %cst_27 = arith.constant 0.000000e+00 : f32
    %45 = vector.broadcast %cst_27 : f32 to vector<8x128xf32>
    %46 = arith.cmpf oge, %39, %45 : vector<8x128xf32>
    %cst_28 = arith.constant 2.000000e+00 : f32
    %47 = vector.broadcast %cst_28 : f32 to vector<8x128xf32>
    %48 = arith.mulf %47, %43 : vector<8x128xf32>
    %cst_29 = arith.constant 1.000000e+00 : f32
    %49 = vector.broadcast %cst_29 : f32 to vector<8x128xf32>
    %50 = arith.addf %48, %49 : vector<8x128xf32>
    %cst_30 = arith.constant 2.000000e+00 : f32
    %51 = vector.broadcast %cst_30 : f32 to vector<8x128xf32>
    %52 = arith.mulf %51, %43 : vector<8x128xf32>
    %53 = arith.addf %44, %52 : vector<8x128xf32>
    %54 = arith.select %46, %50, %53 : vector<8x128xi1>, vector<8x128xf32>
    %cst_31 = arith.constant 2.000000e+00 : f32
    %55 = vector.broadcast %cst_31 : f32 to vector<8x128xf32>
    %56 = arith.mulf %55, %44 : vector<8x128xf32>
    %cst_32 = arith.constant 2.000000e+00 : f32
    %57 = vector.broadcast %cst_32 : f32 to vector<8x128xf32>
    %58 = arith.mulf %57, %43 : vector<8x128xf32>
    %59 = arith.addf %56, %58 : vector<8x128xf32>
    %cst_33 = arith.constant 1.000000e+00 : f32
    %60 = vector.broadcast %cst_33 : f32 to vector<8x128xf32>
    %61 = arith.addf %59, %60 : vector<8x128xf32>
    %cst_34 = arith.constant 2.000000e+00 : f32
    %62 = vector.broadcast %cst_34 : f32 to vector<8x128xf32>
    %63 = arith.mulf %62, %43 : vector<8x128xf32>
    %64 = arith.addf %44, %63 : vector<8x128xf32>
    %cst_35 = arith.constant 2.000000e+00 : f32
    %65 = vector.broadcast %cst_35 : f32 to vector<8x128xf32>
    %66 = arith.addf %64, %65 : vector<8x128xf32>
    %67 = arith.select %46, %61, %66 : vector<8x128xi1>, vector<8x128xf32>
    %68 = arith.mulf %39, %54 : vector<8x128xf32>
    %69 = arith.divf %68, %67 : vector<8x128xf32>
    %70 = arith.addf %69, %11 : vector<8x128xf32>
    %c1 = arith.constant 1 : index
    %c0_36 = arith.constant 0 : index
    %c0_37 = arith.constant 0 : index
    %71 = vector.load %arg6[%c1, %c0_36, %c0_37] : memref<4x128x256xf32, #tpu.memory_space<vmem>>, vector<1x128x256xf32>
    %72 = vector.shape_cast %71 : vector<1x128x256xf32> to vector<128x256xf32>
    %cst_38 = arith.constant dense<0.000000e+00> : vector<8x256xf32>
    %73 = tpu.matmul %70, %72, %cst_38 {dimension_numbers = #tpu.dot_dimension_numbers<[1], [0], [0], [1], [0, 0, 1, 1], [], []>} : vector<8x128xf32>, vector<128x256xf32>, vector<8x256xf32> -> vector<8x256xf32>
    %c1_39 = arith.constant 1 : index
    %c0_40 = arith.constant 0 : index
    %c0_41 = arith.constant 0 : index
    %74 = vector.load %arg7[%c1_39, %c0_40, %c0_41] : memref<4x1x256xf32, #tpu.memory_space<vmem>>, vector<1x1x256xf32>
    %75 = vector.shape_cast %74 : vector<1x1x256xf32> to vector<1x256xf32>
    %76 = vector.broadcast %75 : vector<1x256xf32> to vector<8x256xf32>
    %77 = arith.addf %73, %76 : vector<8x256xf32>
    %78 = vector.extract_strided_slice %77 {offsets = [0, 0], sizes = [8, 128], strides = [1, 1]} : vector<8x256xf32> to vector<8x128xf32>
    %79 = vector.extract_strided_slice %77 {offsets = [0, 128], sizes = [8, 128], strides = [1, 1]} : vector<8x256xf32> to vector<8x128xf32>
    %80 = arith.subf %78, %79 : vector<8x128xf32>
    %81 = arith.mulf %80, %80 : vector<8x128xf32>
    %cst_42 = arith.constant dense<0.000000e+00> : vector<8xf32>
    %82 = vector.multi_reduction <add>, %81, %cst_42 [1] : vector<8x128xf32> to vector<8xf32>
    %83 = vector.shape_cast %82 : vector<8xf32> to vector<8x1xf32>
    %cst_43 = arith.constant 7.812500e-03 : f32
    %84 = vector.broadcast %cst_43 : f32 to vector<8x1xf32>
    %85 = arith.mulf %83, %84 : vector<8x1xf32>
    %cst_44 = arith.constant 9.99999974E-6 : f32
    %86 = vector.broadcast %cst_44 : f32 to vector<8x1xf32>
    %87 = arith.addf %85, %86 : vector<8x1xf32>
    %88 = math.rsqrt %87 : vector<8x1xf32>
    %c1_45 = arith.constant 1 : index
    %c0_46 = arith.constant 0 : index
    %c0_47 = arith.constant 0 : index
    %89 = vector.load %arg8[%c1_45, %c0_46, %c0_47] : memref<4x1x128xf32, #tpu.memory_space<vmem>>, vector<1x1x128xf32>
    %90 = vector.shape_cast %89 : vector<1x1x128xf32> to vector<1x128xf32>
    %91 = vector.broadcast %88 : vector<8x1xf32> to vector<8x128xf32>
    %92 = vector.broadcast %90 : vector<1x128xf32> to vector<8x128xf32>
    %93 = arith.mulf %91, %92 : vector<8x128xf32>
    %94 = arith.mulf %80, %93 : vector<8x128xf32>
    %c1_48 = arith.constant 1 : index
    %c0_49 = arith.constant 0 : index
    %c0_50 = arith.constant 0 : index
    %95 = vector.load %arg9[%c1_48, %c0_49, %c0_50] : memref<4x1x128xf32, #tpu.memory_space<vmem>>, vector<1x1x128xf32>
    %96 = vector.shape_cast %95 : vector<1x1x128xf32> to vector<1x128xf32>
    %97 = vector.broadcast %96 : vector<1x128xf32> to vector<8x128xf32>
    %98 = arith.addf %94, %97 : vector<8x128xf32>
    %99 = math.absf %98 : vector<8x128xf32>
    %cst_51 = arith.constant 0.000000e+00 : f32
    %100 = vector.broadcast %cst_51 : f32 to vector<8x128xf32>
    %101 = arith.subf %100, %99 : vector<8x128xf32>
    %102 = math.exp %101 : vector<8x128xf32>
    %103 = arith.mulf %102, %102 : vector<8x128xf32>
    %cst_52 = arith.constant 0.000000e+00 : f32
    %104 = vector.broadcast %cst_52 : f32 to vector<8x128xf32>
    %105 = arith.cmpf oge, %98, %104 : vector<8x128xf32>
    %cst_53 = arith.constant 2.000000e+00 : f32
    %106 = vector.broadcast %cst_53 : f32 to vector<8x128xf32>
    %107 = arith.mulf %106, %102 : vector<8x128xf32>
    %cst_54 = arith.constant 1.000000e+00 : f32
    %108 = vector.broadcast %cst_54 : f32 to vector<8x128xf32>
    %109 = arith.addf %107, %108 : vector<8x128xf32>
    %cst_55 = arith.constant 2.000000e+00 : f32
    %110 = vector.broadcast %cst_55 : f32 to vector<8x128xf32>
    %111 = arith.mulf %110, %102 : vector<8x128xf32>
    %112 = arith.addf %103, %111 : vector<8x128xf32>
    %113 = arith.select %105, %109, %112 : vector<8x128xi1>, vector<8x128xf32>
    %cst_56 = arith.constant 2.000000e+00 : f32
    %114 = vector.broadcast %cst_56 : f32 to vector<8x128xf32>
    %115 = arith.mulf %114, %103 : vector<8x128xf32>
    %cst_57 = arith.constant 2.000000e+00 : f32
    %116 = vector.broadcast %cst_57 : f32 to vector<8x128xf32>
    %117 = arith.mulf %116, %102 : vector<8x128xf32>
    %118 = arith.addf %115, %117 : vector<8x128xf32>
    %cst_58 = arith.constant 1.000000e+00 : f32
    %119 = vector.broadcast %cst_58 : f32 to vector<8x128xf32>
    %120 = arith.addf %118, %119 : vector<8x128xf32>
    %cst_59 = arith.constant 2.000000e+00 : f32
    %121 = vector.broadcast %cst_59 : f32 to vector<8x128xf32>
    %122 = arith.mulf %121, %102 : vector<8x128xf32>
    %123 = arith.addf %103, %122 : vector<8x128xf32>
    %cst_60 = arith.constant 2.000000e+00 : f32
    %124 = vector.broadcast %cst_60 : f32 to vector<8x128xf32>
    %125 = arith.addf %123, %124 : vector<8x128xf32>
    %126 = arith.select %105, %120, %125 : vector<8x128xi1>, vector<8x128xf32>
    %127 = arith.mulf %98, %113 : vector<8x128xf32>
    %128 = arith.divf %127, %126 : vector<8x128xf32>
    %129 = arith.addf %128, %11 : vector<8x128xf32>
    %c2 = arith.constant 2 : index
    %c0_61 = arith.constant 0 : index
    %c0_62 = arith.constant 0 : index
    %130 = vector.load %arg6[%c2, %c0_61, %c0_62] : memref<4x128x256xf32, #tpu.memory_space<vmem>>, vector<1x128x256xf32>
    %131 = vector.shape_cast %130 : vector<1x128x256xf32> to vector<128x256xf32>
    %cst_63 = arith.constant dense<0.000000e+00> : vector<8x256xf32>
    %132 = tpu.matmul %129, %131, %cst_63 {dimension_numbers = #tpu.dot_dimension_numbers<[1], [0], [0], [1], [0, 0, 1, 1], [], []>} : vector<8x128xf32>, vector<128x256xf32>, vector<8x256xf32> -> vector<8x256xf32>
    %c2_64 = arith.constant 2 : index
    %c0_65 = arith.constant 0 : index
    %c0_66 = arith.constant 0 : index
    %133 = vector.load %arg7[%c2_64, %c0_65, %c0_66] : memref<4x1x256xf32, #tpu.memory_space<vmem>>, vector<1x1x256xf32>
    %134 = vector.shape_cast %133 : vector<1x1x256xf32> to vector<1x256xf32>
    %135 = vector.broadcast %134 : vector<1x256xf32> to vector<8x256xf32>
    %136 = arith.addf %132, %135 : vector<8x256xf32>
    %137 = vector.extract_strided_slice %136 {offsets = [0, 0], sizes = [8, 128], strides = [1, 1]} : vector<8x256xf32> to vector<8x128xf32>
    %138 = vector.extract_strided_slice %136 {offsets = [0, 128], sizes = [8, 128], strides = [1, 1]} : vector<8x256xf32> to vector<8x128xf32>
    %139 = arith.subf %137, %138 : vector<8x128xf32>
    %140 = arith.mulf %139, %139 : vector<8x128xf32>
    %cst_67 = arith.constant dense<0.000000e+00> : vector<8xf32>
    %141 = vector.multi_reduction <add>, %140, %cst_67 [1] : vector<8x128xf32> to vector<8xf32>
    %142 = vector.shape_cast %141 : vector<8xf32> to vector<8x1xf32>
    %cst_68 = arith.constant 7.812500e-03 : f32
    %143 = vector.broadcast %cst_68 : f32 to vector<8x1xf32>
    %144 = arith.mulf %142, %143 : vector<8x1xf32>
    %cst_69 = arith.constant 9.99999974E-6 : f32
    %145 = vector.broadcast %cst_69 : f32 to vector<8x1xf32>
    %146 = arith.addf %144, %145 : vector<8x1xf32>
    %147 = math.rsqrt %146 : vector<8x1xf32>
    %c2_70 = arith.constant 2 : index
    %c0_71 = arith.constant 0 : index
    %c0_72 = arith.constant 0 : index
    %148 = vector.load %arg8[%c2_70, %c0_71, %c0_72] : memref<4x1x128xf32, #tpu.memory_space<vmem>>, vector<1x1x128xf32>
    %149 = vector.shape_cast %148 : vector<1x1x128xf32> to vector<1x128xf32>
    %150 = vector.broadcast %147 : vector<8x1xf32> to vector<8x128xf32>
    %151 = vector.broadcast %149 : vector<1x128xf32> to vector<8x128xf32>
    %152 = arith.mulf %150, %151 : vector<8x128xf32>
    %153 = arith.mulf %139, %152 : vector<8x128xf32>
    %c2_73 = arith.constant 2 : index
    %c0_74 = arith.constant 0 : index
    %c0_75 = arith.constant 0 : index
    %154 = vector.load %arg9[%c2_73, %c0_74, %c0_75] : memref<4x1x128xf32, #tpu.memory_space<vmem>>, vector<1x1x128xf32>
    %155 = vector.shape_cast %154 : vector<1x1x128xf32> to vector<1x128xf32>
    %156 = vector.broadcast %155 : vector<1x128xf32> to vector<8x128xf32>
    %157 = arith.addf %153, %156 : vector<8x128xf32>
    %158 = math.absf %157 : vector<8x128xf32>
    %cst_76 = arith.constant 0.000000e+00 : f32
    %159 = vector.broadcast %cst_76 : f32 to vector<8x128xf32>
    %160 = arith.subf %159, %158 : vector<8x128xf32>
    %161 = math.exp %160 : vector<8x128xf32>
    %162 = arith.mulf %161, %161 : vector<8x128xf32>
    %cst_77 = arith.constant 0.000000e+00 : f32
    %163 = vector.broadcast %cst_77 : f32 to vector<8x128xf32>
    %164 = arith.cmpf oge, %157, %163 : vector<8x128xf32>
    %cst_78 = arith.constant 2.000000e+00 : f32
    %165 = vector.broadcast %cst_78 : f32 to vector<8x128xf32>
    %166 = arith.mulf %165, %161 : vector<8x128xf32>
    %cst_79 = arith.constant 1.000000e+00 : f32
    %167 = vector.broadcast %cst_79 : f32 to vector<8x128xf32>
    %168 = arith.addf %166, %167 : vector<8x128xf32>
    %cst_80 = arith.constant 2.000000e+00 : f32
    %169 = vector.broadcast %cst_80 : f32 to vector<8x128xf32>
    %170 = arith.mulf %169, %161 : vector<8x128xf32>
    %171 = arith.addf %162, %170 : vector<8x128xf32>
    %172 = arith.select %164, %168, %171 : vector<8x128xi1>, vector<8x128xf32>
    %cst_81 = arith.constant 2.000000e+00 : f32
    %173 = vector.broadcast %cst_81 : f32 to vector<8x128xf32>
    %174 = arith.mulf %173, %162 : vector<8x128xf32>
    %cst_82 = arith.constant 2.000000e+00 : f32
    %175 = vector.broadcast %cst_82 : f32 to vector<8x128xf32>
    %176 = arith.mulf %175, %161 : vector<8x128xf32>
    %177 = arith.addf %174, %176 : vector<8x128xf32>
    %cst_83 = arith.constant 1.000000e+00 : f32
    %178 = vector.broadcast %cst_83 : f32 to vector<8x128xf32>
    %179 = arith.addf %177, %178 : vector<8x128xf32>
    %cst_84 = arith.constant 2.000000e+00 : f32
    %180 = vector.broadcast %cst_84 : f32 to vector<8x128xf32>
    %181 = arith.mulf %180, %161 : vector<8x128xf32>
    %182 = arith.addf %162, %181 : vector<8x128xf32>
    %cst_85 = arith.constant 2.000000e+00 : f32
    %183 = vector.broadcast %cst_85 : f32 to vector<8x128xf32>
    %184 = arith.addf %182, %183 : vector<8x128xf32>
    %185 = arith.select %164, %179, %184 : vector<8x128xi1>, vector<8x128xf32>
    %186 = arith.mulf %157, %172 : vector<8x128xf32>
    %187 = arith.divf %186, %185 : vector<8x128xf32>
    %188 = arith.addf %187, %11 : vector<8x128xf32>
    %c3 = arith.constant 3 : index
    %c0_86 = arith.constant 0 : index
    %c0_87 = arith.constant 0 : index
    %189 = vector.load %arg6[%c3, %c0_86, %c0_87] : memref<4x128x256xf32, #tpu.memory_space<vmem>>, vector<1x128x256xf32>
    %190 = vector.shape_cast %189 : vector<1x128x256xf32> to vector<128x256xf32>
    %cst_88 = arith.constant dense<0.000000e+00> : vector<8x256xf32>
    %191 = tpu.matmul %188, %190, %cst_88 {dimension_numbers = #tpu.dot_dimension_numbers<[1], [0], [0], [1], [0, 0, 1, 1], [], []>} : vector<8x128xf32>, vector<128x256xf32>, vector<8x256xf32> -> vector<8x256xf32>
    %c3_89 = arith.constant 3 : index
    %c0_90 = arith.constant 0 : index
    %c0_91 = arith.constant 0 : index
    %192 = vector.load %arg7[%c3_89, %c0_90, %c0_91] : memref<4x1x256xf32, #tpu.memory_space<vmem>>, vector<1x1x256xf32>
    %193 = vector.shape_cast %192 : vector<1x1x256xf32> to vector<1x256xf32>
    %194 = vector.broadcast %193 : vector<1x256xf32> to vector<8x256xf32>
    %195 = arith.addf %191, %194 : vector<8x256xf32>
    %196 = vector.extract_strided_slice %195 {offsets = [0, 0], sizes = [8, 128], strides = [1, 1]} : vector<8x256xf32> to vector<8x128xf32>
    %197 = vector.extract_strided_slice %195 {offsets = [0, 128], sizes = [8, 128], strides = [1, 1]} : vector<8x256xf32> to vector<8x128xf32>
    %198 = arith.subf %196, %197 : vector<8x128xf32>
    %199 = arith.mulf %198, %198 : vector<8x128xf32>
    %cst_92 = arith.constant dense<0.000000e+00> : vector<8xf32>
    %200 = vector.multi_reduction <add>, %199, %cst_92 [1] : vector<8x128xf32> to vector<8xf32>
    %201 = vector.shape_cast %200 : vector<8xf32> to vector<8x1xf32>
    %cst_93 = arith.constant 7.812500e-03 : f32
    %202 = vector.broadcast %cst_93 : f32 to vector<8x1xf32>
    %203 = arith.mulf %201, %202 : vector<8x1xf32>
    %cst_94 = arith.constant 9.99999974E-6 : f32
    %204 = vector.broadcast %cst_94 : f32 to vector<8x1xf32>
    %205 = arith.addf %203, %204 : vector<8x1xf32>
    %206 = math.rsqrt %205 : vector<8x1xf32>
    %c3_95 = arith.constant 3 : index
    %c0_96 = arith.constant 0 : index
    %c0_97 = arith.constant 0 : index
    %207 = vector.load %arg8[%c3_95, %c0_96, %c0_97] : memref<4x1x128xf32, #tpu.memory_space<vmem>>, vector<1x1x128xf32>
    %208 = vector.shape_cast %207 : vector<1x1x128xf32> to vector<1x128xf32>
    %209 = vector.broadcast %206 : vector<8x1xf32> to vector<8x128xf32>
    %210 = vector.broadcast %208 : vector<1x128xf32> to vector<8x128xf32>
    %211 = arith.mulf %209, %210 : vector<8x128xf32>
    %212 = arith.mulf %198, %211 : vector<8x128xf32>
    %c3_98 = arith.constant 3 : index
    %c0_99 = arith.constant 0 : index
    %c0_100 = arith.constant 0 : index
    %213 = vector.load %arg9[%c3_98, %c0_99, %c0_100] : memref<4x1x128xf32, #tpu.memory_space<vmem>>, vector<1x1x128xf32>
    %214 = vector.shape_cast %213 : vector<1x1x128xf32> to vector<1x128xf32>
    %215 = vector.broadcast %214 : vector<1x128xf32> to vector<8x128xf32>
    %216 = arith.addf %212, %215 : vector<8x128xf32>
    %217 = math.absf %216 : vector<8x128xf32>
    %cst_101 = arith.constant 0.000000e+00 : f32
    %218 = vector.broadcast %cst_101 : f32 to vector<8x128xf32>
    %219 = arith.subf %218, %217 : vector<8x128xf32>
    %220 = math.exp %219 : vector<8x128xf32>
    %221 = arith.mulf %220, %220 : vector<8x128xf32>
    %cst_102 = arith.constant 0.000000e+00 : f32
    %222 = vector.broadcast %cst_102 : f32 to vector<8x128xf32>
    %223 = arith.cmpf oge, %216, %222 : vector<8x128xf32>
    %cst_103 = arith.constant 2.000000e+00 : f32
    %224 = vector.broadcast %cst_103 : f32 to vector<8x128xf32>
    %225 = arith.mulf %224, %220 : vector<8x128xf32>
    %cst_104 = arith.constant 1.000000e+00 : f32
    %226 = vector.broadcast %cst_104 : f32 to vector<8x128xf32>
    %227 = arith.addf %225, %226 : vector<8x128xf32>
    %cst_105 = arith.constant 2.000000e+00 : f32
    %228 = vector.broadcast %cst_105 : f32 to vector<8x128xf32>
    %229 = arith.mulf %228, %220 : vector<8x128xf32>
    %230 = arith.addf %221, %229 : vector<8x128xf32>
    %231 = arith.select %223, %227, %230 : vector<8x128xi1>, vector<8x128xf32>
    %cst_106 = arith.constant 2.000000e+00 : f32
    %232 = vector.broadcast %cst_106 : f32 to vector<8x128xf32>
    %233 = arith.mulf %232, %221 : vector<8x128xf32>
    %cst_107 = arith.constant 2.000000e+00 : f32
    %234 = vector.broadcast %cst_107 : f32 to vector<8x128xf32>
    %235 = arith.mulf %234, %220 : vector<8x128xf32>
    %236 = arith.addf %233, %235 : vector<8x128xf32>
    %cst_108 = arith.constant 1.000000e+00 : f32
    %237 = vector.broadcast %cst_108 : f32 to vector<8x128xf32>
    %238 = arith.addf %236, %237 : vector<8x128xf32>
    %cst_109 = arith.constant 2.000000e+00 : f32
    %239 = vector.broadcast %cst_109 : f32 to vector<8x128xf32>
    %240 = arith.mulf %239, %220 : vector<8x128xf32>
    %241 = arith.addf %221, %240 : vector<8x128xf32>
    %cst_110 = arith.constant 2.000000e+00 : f32
    %242 = vector.broadcast %cst_110 : f32 to vector<8x128xf32>
    %243 = arith.addf %241, %242 : vector<8x128xf32>
    %244 = arith.select %223, %238, %243 : vector<8x128xi1>, vector<8x128xf32>
    %245 = arith.mulf %216, %231 : vector<8x128xf32>
    %246 = arith.divf %245, %244 : vector<8x128xf32>
    %247 = arith.addf %246, %11 : vector<8x128xf32>
    %c0_111 = arith.constant 0 : index
    %c0_112 = arith.constant 0 : index
    %248 = vector.load %arg10[%c0_111, %c0_112] : memref<128x128xf32, #tpu.memory_space<vmem>>, vector<128x128xf32>
    %cst_113 = arith.constant dense<0.000000e+00> : vector<8x128xf32>
    %249 = tpu.matmul %247, %248, %cst_113 {dimension_numbers = #tpu.dot_dimension_numbers<[1], [0], [0], [1], [0, 0, 1, 1], [], []>} : vector<8x128xf32>, vector<128x128xf32>, vector<8x128xf32> -> vector<8x128xf32>
    %c0_114 = arith.constant 0 : index
    %c0_115 = arith.constant 0 : index
    %250 = vector.load %arg11[%c0_114, %c0_115] : memref<1x128xf32, #tpu.memory_space<vmem>>, vector<1x128xf32>
    %251 = vector.broadcast %250 : vector<1x128xf32> to vector<8x128xf32>
    %252 = arith.addf %249, %251 : vector<8x128xf32>
    %c0_116 = arith.constant 0 : index
    %c0_117 = arith.constant 0 : index
    %253 = vector.load %arg12[%c0_116, %c0_117] : memref<8x128xf32, #tpu.memory_space<vmem>>, vector<8x128xf32>
    tpu.vector_store %arg12[%c0_116, %c0_117], %252 {strides = array<i32>} : memref<8x128xf32, #tpu.memory_space<vmem>>, vector<8x128xf32>,
    return
  }
  func.func @transform_0(%arg0: i32) -> (i32, i32) {
    %c0_i32 = arith.constant 0 : i32
    %c0_i32_0 = arith.constant 0 : i32
    return %arg0, %c0_i32 : i32, i32
  }
  func.func @transform_1(%arg0: i32) -> (i32, i32) {
    %c0_i32 = arith.constant 0 : i32
    %c0_i32_0 = arith.constant 0 : i32
    return %arg0, %c0_i32 : i32, i32
  }
  func.func @transform_2(%arg0: i32) -> (i32, i32) {
    %c0_i32 = arith.constant 0 : i32
    %c0_i32_0 = arith.constant 0 : i32
    %c0_i32_1 = arith.constant 0 : i32
    return %c0_i32, %c0_i32_0 : i32, i32
  }
  func.func @transform_3(%arg0: i32) -> (i32, i32) {
    %c0_i32 = arith.constant 0 : i32
    %c0_i32_0 = arith.constant 0 : i32
    %c0_i32_1 = arith.constant 0 : i32
    return %c0_i32, %c0_i32_0 : i32, i32
  }
  func.func @transform_4(%arg0: i32) -> (i32, i32) {
    %c0_i32 = arith.constant 0 : i32
    %c0_i32_0 = arith.constant 0 : i32
    %c0_i32_1 = arith.constant 0 : i32
    return %c0_i32, %c0_i32_0 : i32, i32
  }
  func.func @transform_5(%arg0: i32) -> (i32, i32, i32) {
    %c0_i32 = arith.constant 0 : i32
    %c0_i32_0 = arith.constant 0 : i32
    %c0_i32_1 = arith.constant 0 : i32
    %c0_i32_2 = arith.constant 0 : i32
    return %c0_i32, %c0_i32_0, %c0_i32_1 : i32, i32, i32
  }
  func.func @transform_6(%arg0: i32) -> (i32, i32, i32) {
    %c0_i32 = arith.constant 0 : i32
    %c0_i32_0 = arith.constant 0 : i32
    %c0_i32_1 = arith.constant 0 : i32
    %c0_i32_2 = arith.constant 0 : i32
    return %c0_i32, %c0_i32_0, %c0_i32_1 : i32, i32, i32
  }
  func.func @transform_7(%arg0: i32) -> (i32, i32, i32) {
    %c0_i32 = arith.constant 0 : i32
    %c0_i32_0 = arith.constant 0 : i32
    %c0_i32_1 = arith.constant 0 : i32
    %c0_i32_2 = arith.constant 0 : i32
    return %c0_i32, %c0_i32_0, %c0_i32_1 : i32, i32, i32
  }
  func.func @transform_8(%arg0: i32) -> (i32, i32, i32) {
    %c0_i32 = arith.constant 0 : i32
    %c0_i32_0 = arith.constant 0 : i32
    %c0_i32_1 = arith.constant 0 : i32
    %c0_i32_2 = arith.constant 0 : i32
    return %c0_i32, %c0_i32_0, %c0_i32_1 : i32, i32, i32
  }
  func.func @transform_9(%arg0: i32) -> (i32, i32) {
    %c0_i32 = arith.constant 0 : i32
    %c0_i32_0 = arith.constant 0 : i32
    %c0_i32_1 = arith.constant 0 : i32
    return %c0_i32, %c0_i32_0 : i32, i32
  }
  func.func @transform_10(%arg0: i32) -> (i32, i32) {
    %c0_i32 = arith.constant 0 : i32
    %c0_i32_0 = arith.constant 0 : i32
    %c0_i32_1 = arith.constant 0 : i32
    return %c0_i32, %c0_i32_0 : i32, i32
  }
  func.func @transform_11(%arg0: i32) -> (i32, i32) {
    %c0_i32 = arith.constant 0 : i32
    %c0_i32_0 = arith.constant 0 : i32
    return %arg0, %c0_i32 : i32, i32
  }
}

</mosaic_0001>

<bundles_post_ra>
// kernel: conditional_noise_predictor_padded.1
= control target key start
LH: loop header
LB: loop body
LE: loop exit
PB: predicated region body
PF: predicated region fallthrough
CT: control target
= control target key end

     0   :  { %16 = vsyncpa [#allocation3], 0  ;;  %s1579_s0 = inlined_call_operand.hbm [shape: f32[8,16], index: 0, kind: input, shape index: {}]   ;;  %s1580_s1 = inlined_call_operand.hbm [shape: f32[8,40], index: 1, kind: input, shape index: {}]   ;;  %s1581_s2 = inlined_call_operand.hbm [shape: f32[16,256], index: 2, kind: input, shape index: {}]   ;;  %s1582_s3 = inlined_call_operand.hbm [shape: f32[40,256], index: 3, kind: input, shape index: {}]   ;;  %s1583_s4 = inlined_call_operand.hbm [shape: f32[1,256], index: 4, kind: input, shape index: {}]   ;;  %s1584_s5 = inlined_call_operand.hbm [shape: f32[4,128,256], index: 5, kind: input, shape index: {}]   ;;  %s1585_s6 = inlined_call_operand.hbm [shape: f32[4,1,256], index: 6, kind: input, shape index: {}]   ;;  %s1586_s7 = inlined_call_operand.vmem [shape: f32[4,1,128], index: 7, kind: input, shape index: {}]   ;;  %s1587_s8 = inlined_call_operand.vmem [shape: f32[4,1,128], index: 8, kind: input, shape index: {}]   ;;  %s1588_s9 = inlined_call_operand.hbm [shape: f32[128,128], index: 9, kind: input, shape index: {}]   ;;  %s1589_s10 = inlined_call_operand.vmem [shape: f32[1,128], index: 10, kind: input, shape index: {}]   ;;  %s1590_s11 = inlined_call_operand.hbm [shape: f32[8,128], index: 11, kind: output, shape index: {}]  }
   0x1   :  { %17 = vsyncpa [#allocation6], 0 }
   0x2   :  { %18 = vsyncpa [#allocation9], 0 }
   0x3   :  { %19 = vsyncpa [#allocation12], 0 }
   0x4   :  { %20 = vsyncpa [#allocation15], 0 }
   0x5   :  { %21 = vsyncpa [#allocation4], 0  ;;  %s1381_s17 = smov [#allocation5]  }
   0x6   :  { %s38_s18 = sshll.u32 %s1381_s17, 4  ;;  %s39_s18 = int_to_ptr.vmem [resolvable:$true] %s38_s18 }
   0x7   :  { %s1197_s19 = scalar_lea.vmem %s39_s18, 128  ;;  %p1202_p1 = scmp.lt.s32.totalorder %s39_s18, %s39_s18 }
   0x8   :  { %p1198_p0 = scmp.ne.s32.totalorder %s39_s18, %s1197_s19  ;;  %p1203_p2 = scmp.lt.s32.totalorder %s1197_s19, %s1197_s19 }
   0xa   :  { %p1204_p3 = por %p1203_p2, %p1202_p1 }
   0xc   :  { %p1205_p4 = pnand %p1204_p3, %p1198_p0 }
   0xe   :  { %1208 = shalt.err (!%p1205_p4)
}
   0xf   :  { %41 = dma.hbm_to_vmem [thread:$0]  %s1580_s1, 128, %s39_s18, [#allocation6]  }
  0x10   :  { %s1382_s22 = smov [#allocation8]   ;;  %s1383_s24 = smov [#allocation11]  }
  0x11   :  { %s59_s23 = sshll.u32 %s1382_s22, 4  ;;  %s81_s25 = sshll.u32 %s1383_s24, 4  ;;  %s60_s23 = int_to_ptr.vmem [resolvable:$true] %s59_s23  ;;  %s82_s25 = int_to_ptr.vmem [resolvable:$true] %s81_s25 }
  0x12   :  { %s1217_s26 = scalar_lea.vmem %s60_s23, 1280  ;;  %p1222_p6 = scmp.lt.s32.totalorder %s60_s23, %s60_s23 }
  0x13   :  { %p1218_p5 = scmp.ne.s32.totalorder %s60_s23, %s1217_s26  ;;  %p1223_p7 = scmp.lt.s32.totalorder %s1217_s26, %s1217_s26 }
  0x15   :  { %p1224_p8 = por %p1223_p7, %p1222_p6 }
  0x17   :  { %p1225_p9 = pnand %p1224_p8, %p1218_p5 }
  0x19   :  { %1228 = shalt.err (!%p1225_p9)
}
  0x1a   :  { %s1384_s27 = smov 256   ;;  %s1385_s28 = smov 16  }
  0x1b   :  { %65 = dma.hbm_to_vmem [thread:$0]  %s1582_s3, 1280, %s60_s23, [#allocation9], %s1384_s27, %s1384_s27, %s1385_s28  }
  0x1c   :  { %s1237_s1 = scalar_lea.vmem %s82_s25, 16384  ;;  %p1242_p11 = scmp.lt.s32.totalorder %s82_s25, %s82_s25 }
  0x1d   :  { %p1238_p10 = scmp.ne.s32.totalorder %s82_s25, %s1237_s1  ;;  %p1243_p12 = scmp.lt.s32.totalorder %s1237_s1, %s1237_s1 }
  0x1f   :  { %p1244_p13 = por %p1243_p12, %p1242_p11 }
  0x21   :  { %p1245_p0 = pnand %p1244_p13, %p1238_p10 }
  0x23   :  { %1248 = shalt.err (!%p1245_p0)
}
  0x24   :  { %87 = dma.hbm_to_vmem [thread:$0]  %s1584_s5, 16384, %s82_s25, [#allocation12], %s1384_s27, %s1384_s27, %s1385_s28  }
  0x25   :  { %s1386_s14 = smov [#allocation2]   ;;  %s1387_s16 = smov [#allocation7]  }
  0x26   :  { %s28_s15 = sshll.u32 %s1386_s14, 4  ;;  %s47_s3 = sshll.u32 %s1387_s16, 4  ;;  %s29_s15 = int_to_ptr.vmem [resolvable:$true] %s28_s15  ;;  %s48_s3 = int_to_ptr.vmem [resolvable:$true] %s47_s3 }
  0x27   :  { %s1257_s17 = scalar_lea.vmem %s29_s15, 128  ;;  %p1262_p2 = scmp.lt.s32.totalorder %s29_s15, %s29_s15 }
  0x28   :  { %p1258_p1 = scmp.ne.s32.totalorder %s29_s15, %s1257_s17  ;;  %p1263_p3 = scmp.lt.s32.totalorder %s1257_s17, %s1257_s17 }
  0x2a   :  { %p1264_p4 = por %p1263_p3, %p1262_p2 }
  0x2c   :  { %p1265_p5 = pnand %p1264_p4, %p1258_p1 }
  0x2e   :  { %1268 = shalt.err (!%p1265_p5)
}
  0x2f   :  { %31 = dma.hbm_to_vmem [thread:$0]  %s1579_s0, 128, %s29_s15, [#allocation3]  }
  0x30   :  { %s1277_s20 = scalar_lea.vmem %s48_s3, 512  ;;  %p1282_p7 = scmp.lt.s32.totalorder %s48_s3, %s48_s3 }
  0x31   :  { %p1278_p6 = scmp.ne.s32.totalorder %s48_s3, %s1277_s20  ;;  %p1283_p8 = scmp.lt.s32.totalorder %s1277_s20, %s1277_s20 }
  0x33   :  { %p1284_p9 = por %p1283_p8, %p1282_p7 }
  0x35   :  { %p1285_p10 = pnand %p1284_p9, %p1278_p6 }
  0x37   :  { %1288 = shalt.err (!%p1285_p10)
}
  0x38   :  { %53 = dma.hbm_to_vmem [thread:$0]  %s1581_s2, 512, %s48_s3, [#allocation6], %s1384_s27, %s1384_s27, %s1385_s28  }
  0x39   :  { %s1388_s22 = smov [#allocation10]   ;;  %s1389_s24 = smov [#allocation13]  }
  0x3a   :  { %s72_s23 = sshll.u32 %s1388_s22, 4  ;;  %s93_s0 = sshll.u32 %s1389_s24, 4  ;;  %s73_s23 = int_to_ptr.vmem [resolvable:$true] %s72_s23  ;;  %s94_s0 = int_to_ptr.vmem [resolvable:$true] %s93_s0 }
  0x3b   :  { %s1297_s25 = scalar_lea.vmem %s73_s23, 32  ;;  %p1302_p12 = scmp.lt.s32.totalorder %s73_s23, %s73_s23 }
  0x3c   :  { %p1298_p11 = scmp.ne.s32.totalorder %s73_s23, %s1297_s25  ;;  %p1303_p13 = scmp.lt.s32.totalorder %s1297_s25, %s1297_s25 }
  0x3e   :  { %p1304_p0 = por %p1303_p13, %p1302_p12 }
  0x40   :  { %p1305_p1 = pnand %p1304_p0, %p1298_p11 }
  0x42   :  { %1308 = shalt.err (!%p1305_p1)
}
  0x43   :  { %75 = dma.hbm_to_vmem [thread:$0]  %s1583_s4, 32, %s73_s23, [#allocation9]  }
  0x44   :  { %s1317_s30 = scalar_lea.vmem %s94_s0, 128  ;;  %p1322_p3 = scmp.lt.s32.totalorder %s94_s0, %s94_s0 }
  0x45   :  { %p1318_p2 = scmp.ne.s32.totalorder %s94_s0, %s1317_s30  ;;  %p1323_p4 = scmp.lt.s32.totalorder %s1317_s30, %s1317_s30 }
  0x47   :  { %p1324_p5 = por %p1323_p4, %p1322_p3 }
  0x49   :  { %p1325_p6 = pnand %p1324_p5, %p1318_p2 }
  0x4b   :  { %1328 = shalt.err (!%p1325_p6)
}
  0x4c   :  { %s1390_s2 = smov 32   ;;  %s1391_s27 = smov 2  }
  0x4d   :  { %99 = dma.hbm_to_vmem [thread:$0]  %s1585_s6, 128, %s94_s0, [#allocation12], %s1390_s2, %s1390_s2, %s1391_s27  }
  0x4e   :  { %s1392_s12 = smov [#allocation14]  }
  0x4f   :  { %s109_s13 = sshll.u32 %s1392_s12, 4  ;;  %s110_s13 = int_to_ptr.vmem [resolvable:$true] %s109_s13 }
  0x50   :  { %s1337_s14 = scalar_lea.vmem %s110_s13, 2048  ;;  %p1342_p8 = scmp.lt.s32.totalorder %s110_s13, %s110_s13 }
  0x51   :  { %p1338_p7 = scmp.ne.s32.totalorder %s110_s13, %s1337_s14  ;;  %p1343_p9 = scmp.lt.s32.totalorder %s1337_s14, %s1337_s14 }
  0x53   :  { %p1344_p10 = por %p1343_p9, %p1342_p8 }
  0x55   :  { %p1345_p11 = pnand %p1344_p10, %p1338_p7 }
  0x57   :  { %1348 = shalt.err (!%p1345_p11)
}
  0x58   :  { %s1393_s4 = smov 128   ;;  %s1394_s15 = smov 8  }
  0x59   :  { %115 = dma.hbm_to_vmem [thread:$0]  %s1588_s9, 2048, %s110_s13, [#allocation15], %s1393_s4, %s1393_s4, %s1394_s15  }
  0x5a   :  { %1369 = dma.done.wait [#allocation3], 128  }
  0x5b   :  { %1370 = vsyncadd [#allocation3], 4294967168 }
  0x5c   :  { %1371 = dma.done.wait [#allocation6], 640  }
  0x5d   :  { %1372 = vsyncadd [#allocation6], 4294966656 }
  0x5e   :  { %1373 = dma.done.wait [#allocation9], 1312  }
  0x5f   :  { %1374 = vsyncadd [#allocation9], 4294965984 }
  0x60   :  { %1375 = dma.done.wait [#allocation12], 16512  }
  0x61   :  { %1376 = vsyncadd [#allocation12], 4294950784 }
  0x62   :  { %1377 = dma.done.wait [#allocation15], 2048  }
  0x63   :  { %1378 = vsyncadd [#allocation15], 4294965248  ;;  %v1395_v0 = vmov 0.0   ;;  %v157_v1 = vld [vmem:[#allocation8 + $0x48] sm:$0xff]  ;;  %v156_v2 = vld [vmem:[#allocation8 + $0x40] sm:$0xff]  ;;  %vm158_vm0 = vcmask 326656   ;;  %v310_v49 = vlaneseq }
  0x64   :  { %226 = vmatprep.mubr.f32.mxu0 %v1395_v0  ;;  %430 = vmatprep.mubr.f32.mxu1 %v1395_v0  ;;  %v155_v3 = vld [vmem:[#allocation8 + $0x38] sm:$0xff]  ;;  %v154_v4 = vld [vmem:[#allocation8 + $0x30] sm:$0xff]  ;;  %v153_v5 = vld [vmem:[#allocation8 + $0x28] sm:$0xff]  ;;  %vm233_vm1 = vcmask 130048   ;;  %vm1396_vm5 = vmmov 0   ;;  %s1397_s2 = smov [#allocation16]  }
  0x65   :  { %184 = vmatprep.subr.mxu0 %v157_v1  ;;  %v152_v6 = vld [vmem:[#allocation8 + $0x20] sm:$0xff]  ;;  %v151_v7 = vld [vmem:[#allocation8 + $0x18] sm:$0xff]  ;;  %v150_v8 = vld [vmem:[#allocation8 + $0x10] sm:$0xff]  ;;  %v311_v50 = vshrl.u32 %v310_v49, 7  ;;  %s1066_s27 = sshll.u32 %s1397_s2, 4  ;;  %s1067_s27 = int_to_ptr.vmem [resolvable:$true] %s1066_s27 }
  0x66   :  { %185 = vmatpush1.msra.mxu0 %v156_v2  ;;  %v353_v9 = vld [vmem:[#allocation11 + $0xf8] sm:$0xff]  ;;  %v352_v10 = vld [vmem:[#allocation11 + $0xf0] sm:$0xff]  ;;  %v351_v12 = vld [vmem:[#allocation11 + $0xe8] sm:$0xff]  ;;  %s1349_s28 = scalar_lea.vmem %s1067_s27, 128  ;;  %p1354_p13 = scmp.lt.s32.totalorder %s1067_s27, %s1067_s27 }
  0x67   :  { %186 = vmatprep.subr.mxu0 %v155_v3  ;;  %v149_v11 = vld [vmem:[#allocation8 + $0x8] sm:$0xff]  ;;  %366 = vmatprep.subr.mxu1 %v353_v9  ;;  %v350_v13 = vld [vmem:[#allocation11 + $0xe0] sm:$0xff]  ;;  %v148_v14 = vld [vmem:[#allocation8] sm:$0xff]  ;;  %v1495_v51 = vsub.s32 0, %v311_v50  ;;  %v1497_v54 = vsub.s32 1, %v311_v50  ;;  %p1350_p12 = scmp.ne.s32.totalorder %s1067_s27, %s1349_s28  ;;  %p1355_p0 = scmp.lt.s32.totalorder %s1349_s28, %s1349_s28 }
  0x68   :  { %187 = vmatpush1.msra.mxu0 %v154_v4  ;;  %367 = vmatpush1.msra.mxu1 %v352_v10  ;;  %v349_v15 = vld [vmem:[#allocation11 + $0xd8] sm:$0xff]  ;;  %v147_v16 = vld [vmem:[#allocation5] sm:$0xff]  ;;  %v348_v20 = vld [vmem:[#allocation11 + $0xd0] sm:$0xff] }
  0x69   :  { %188 = vmatprep.subr.mxu0 %v153_v5  ;;  %v146_v17 = vld [vmem:[#allocation7 + $0x18] sm:$0xff]  ;;  %368 = vmatprep.subr.mxu1 %v351_v12  ;;  %v145_v18 = vld [vmem:[#allocation7 + $0x10] sm:$0xff]  ;;  %v144_v19 = vld [vmem:[#allocation7 + $0x8] sm:$0xff]  ;;  %p1356_p1 = por %p1355_p0, %p1354_p13 }
  0x6a   :  { %189 = vmatpush1.msra.mxu0 %v152_v6  ;;  %369 = vmatpush1.msra.mxu1 %v350_v13  ;;  %v143_v21 = vld [vmem:[#allocation7] sm:$0xff]  ;;  %v142_v23 = vld [vmem:[#allocation2] sm:$0xff] }
  0x6b   :  { %190 = vmatprep.subr.mxu0 %v151_v7  ;;  %370 = vmatprep.subr.mxu1 %v349_v15  ;;  %v347_v22 = vld [vmem:[#allocation11 + $0xc8] sm:$0xff]  ;;  %v346_v24 = vld [vmem:[#allocation11 + $0xc0] sm:$0xff]  ;;  %v345_v25 = vld [vmem:[#allocation11 + $0xb8] sm:$0xff]  ;;  %p1357_p2 = pnand %p1356_p1, %p1350_p12 }
  0x6c   :  { %191 = vmatpush1.msra.mxu0 %v150_v8  ;;  %371 = vmatpush1.msra.mxu1 %v348_v20  ;;  %v344_v26 = vld [vmem:[#allocation11 + $0xb0] sm:$0xff]  ;;  %v343_v27 = vld [vmem:[#allocation11 + $0xa8] sm:$0xff]  ;;  %v342_v28 = vld [vmem:[#allocation11 + $0xa0] sm:$0xff] }
  0x6d   :  { %192 = vmatprep.subr.mxu0 %v149_v11  ;;  %372 = vmatprep.subr.mxu1 %v347_v22  ;;  %v341_v29 = vld [vmem:[#allocation11 + $0x98] sm:$0xff]  ;;  %v340_v30 = vld [vmem:[#allocation11 + $0x90] sm:$0xff]  ;;  %v339_v31 = vld [vmem:[#allocation11 + $0x88] sm:$0xff] }
  0x6e   :  { %193 = vmatpush1.msra.mxu0 %v148_v14  ;;  %373 = vmatpush1.msra.mxu1 %v346_v24  ;;  %v338_v32 = vld [vmem:[#allocation11 + $0x80] sm:$0xff]  ;;  %v337_v33 = vld [vmem:[#allocation11 + $0x78] sm:$0xff]  ;;  %v336_v34 = vld [vmem:[#allocation11 + $0x70] sm:$0xff] }
  0x6f   :  { %1079 = vmatmul.mubr.msk.f32.vlgmr.msra.gmra.mxu0 %vm158_vm0, %v147_v16  ;;  %265 = vmatprep.subr.mxu0 %v146_v17  ;;  %v335_v35 = vld [vmem:[#allocation11 + $0x68] sm:$0xff]  ;;  %v334_v36 = vld [vmem:[#allocation11 + $0x60] sm:$0xff]  ;;  %v333_v37 = vld [vmem:[#allocation11 + $0x58] sm:$0xff] }
  0x70   :  { %266 = vmatpush1.msra.mxu0 %v145_v18  ;;  %301 = vmatprep.mubr.f32.mxu0 %v1395_v0  ;;  %v332_v38 = vld [vmem:[#allocation11 + $0x50] sm:$0xff]  ;;  %v331_v39 = vld [vmem:[#allocation11 + $0x48] sm:$0xff]  ;;  %v330_v40 = vld [vmem:[#allocation11 + $0x40] sm:$0xff] }
  0x71   :  { %267 = vmatprep.subr.mxu0 %v144_v19  ;;  %374 = vmatprep.subr.mxu1 %v345_v25  ;;  %v329_v41 = vld [vmem:[#allocation11 + $0x38] sm:$0xff]  ;;  %v328_v42 = vld [vmem:[#allocation11 + $0x30] sm:$0xff]  ;;  %v327_v43 = vld [vmem:[#allocation11 + $0x28] sm:$0xff] }
  0x72   :  { %268 = vmatpush1.msra.mxu0 %v143_v21  ;;  %375 = vmatpush1.msra.mxu1 %v344_v26  ;;  %v326_v44 = vld [vmem:[#allocation11 + $0x20] sm:$0xff]  ;;  %v325_v45 = vld [vmem:[#allocation11 + $0x18] sm:$0xff]  ;;  %v324_v46 = vld [vmem:[#allocation11 + $0x10] sm:$0xff] }
  0x73   :  { %1080 = vmatmul.mubr.msk.f32.vlgmr.msra.gmra.mxu0 %vm233_vm1, %v142_v23  ;;  %376 = vmatprep.subr.mxu1 %v343_v27  ;;  %v323_v47 = vld [vmem:[#allocation11 + $0x8] sm:$0xff]  ;;  %v322_v48 = vld [vmem:[#allocation11] sm:$0xff]  ;;  %v308_v53 = vld [vmem:[#allocation10] sm:$0x3] }
  0x74   :  { %590 = vmatprep.mubr.f32.mxu0 %v1395_v0  ;;  %377 = vmatpush1.msra.mxu1 %v342_v28  ;;  %v313_v56 = vrot.slane %v308_v53, %v1495_v51  ;;  %v317_v59 = vrot.slane %v308_v53, %v1497_v54  ;;  %v354_v1 = vld [vmem:[#allocation13] sm:$0x3]  ;;  %v512_v10 = vld [vmem:[#allocation11 + $0x1f8] sm:$0xff]  ;;  %v511_v11 = vld [vmem:[#allocation11 + $0x1f0] sm:$0xff] }
  0x75   :  { %378 = vmatprep.subr.mxu1 %v341_v29  ;;  %v359_v2 = vrot.slane %v354_v1, %v1495_v51  ;;  %v363_v3 = vrot.slane %v354_v1, %v1497_v54  ;;  %v510_v12 = vld [vmem:[#allocation11 + $0x1e8] sm:$0xff]  ;;  %526 = vmatprep.subr.mxu0 %v512_v10  ;;  %v509_v13 = vld [vmem:[#allocation11 + $0x1e0] sm:$0xff]  ;;  %v508_v14 = vld [vmem:[#allocation11 + $0x1d8] sm:$0xff] }
  0x76   :  { %379 = vmatpush1.msra.mxu1 %v340_v30  ;;  %527 = vmatpush1.msra.mxu0 %v511_v11  ;;  %v507_v15 = vld [vmem:[#allocation11 + $0x1d0] sm:$0xff]  ;;  %v506_v16 = vld [vmem:[#allocation11 + $0x1c8] sm:$0xff]  ;;  %v505_v17 = vld [vmem:[#allocation11 + $0x1c0] sm:$0xff] }
  0x77   :  { %380 = vmatprep.subr.mxu1 %v339_v31  ;;  %528 = vmatprep.subr.mxu0 %v510_v12  ;;  %v504_v18 = vld [vmem:[#allocation11 + $0x1b8] sm:$0xff]  ;;  %v503_v19 = vld [vmem:[#allocation11 + $0x1b0] sm:$0xff]  ;;  %v502_v20 = vld [vmem:[#allocation11 + $0x1a8] sm:$0xff] }
  0x78   :  { %381 = vmatpush1.msra.mxu1 %v338_v32  ;;  %529 = vmatpush1.msra.mxu0 %v509_v13  ;;  %v501_v21 = vld [vmem:[#allocation11 + $0x1a0] sm:$0xff]  ;;  %v500_v22 = vld [vmem:[#allocation11 + $0x198] sm:$0xff]  ;;  %v499_v23 = vld [vmem:[#allocation11 + $0x190] sm:$0xff] }
  0x79   :  { %382 = vmatprep.subr.mxu1 %v337_v33  ;;  %530 = vmatprep.subr.mxu0 %v508_v14  ;;  %v498_v24 = vld [vmem:[#allocation11 + $0x188] sm:$0xff]  ;;  %v497_v25 = vld [vmem:[#allocation11 + $0x180] sm:$0xff]  ;;  %v496_v26 = vld [vmem:[#allocation11 + $0x178] sm:$0xff] }
  0x7a   :  { %383 = vmatpush1.msra.mxu1 %v336_v34  ;;  %531 = vmatpush1.msra.mxu0 %v507_v15  ;;  %v495_v27 = vld [vmem:[#allocation11 + $0x170] sm:$0xff]  ;;  %v494_v28 = vld [vmem:[#allocation11 + $0x168] sm:$0xff]  ;;  %v493_v29 = vld [vmem:[#allocation11 + $0x160] sm:$0xff] }
  0x7b   :  { %384 = vmatprep.subr.mxu1 %v335_v35  ;;  %532 = vmatprep.subr.mxu0 %v506_v16  ;;  %v492_v30 = vld [vmem:[#allocation11 + $0x158] sm:$0xff]  ;;  %v491_v31 = vld [vmem:[#allocation11 + $0x150] sm:$0xff]  ;;  %v490_v32 = vld [vmem:[#allocation11 + $0x148] sm:$0xff] }
  0x7c   :  { %385 = vmatpush1.msra.mxu1 %v334_v36  ;;  %533 = vmatpush1.msra.mxu0 %v505_v17  ;;  %v489_v33 = vld [vmem:[#allocation11 + $0x140] sm:$0xff]  ;;  %v488_v34 = vld [vmem:[#allocation11 + $0x138] sm:$0xff]  ;;  %v487_v35 = vld [vmem:[#allocation11 + $0x130] sm:$0xff] }
  0x7d   :  { %386 = vmatprep.subr.mxu1 %v333_v37  ;;  %534 = vmatprep.subr.mxu0 %v504_v18  ;;  %v486_v36 = vld [vmem:[#allocation11 + $0x128] sm:$0xff]  ;;  %v485_v37 = vld [vmem:[#allocation11 + $0x120] sm:$0xff]  ;;  %v674_v18 = vld [vmem:[#allocation11 + $0x2f8] sm:$0xff] }
  0x7e   :  { %387 = vmatpush1.msra.mxu1 %v332_v38  ;;  %535 = vmatpush1.msra.mxu0 %v503_v19  ;;  %v484_v38 = vld [vmem:[#allocation11 + $0x118] sm:$0xff]  ;;  %v673_v19 = vld [vmem:[#allocation11 + $0x2f0] sm:$0xff] }
  0x7f   :  { %388 = vmatprep.subr.mxu1 %v331_v39  ;;  %536 = vmatprep.subr.mxu0 %v502_v20  ;;  %v483_v39 = vld [vmem:[#allocation11 + $0x110] sm:$0xff]  ;;  %v672_v20 = vld [vmem:[#allocation11 + $0x2e8] sm:$0xff] }
  0x80   :  { %389 = vmatpush1.msra.mxu1 %v330_v40  ;;  %537 = vmatpush1.msra.mxu0 %v501_v21  ;;  %v482_v40 = vld [vmem:[#allocation11 + $0x108] sm:$0xff]  ;;  %v671_v21 = vld [vmem:[#allocation11 + $0x2e0] sm:$0xff] }
  0x81   :  { %390 = vmatprep.subr.mxu1 %v329_v41  ;;  %538 = vmatprep.subr.mxu0 %v500_v22  ;;  %v481_v41 = vld [vmem:[#allocation11 + $0x100] sm:$0xff]  ;;  %v670_v22 = vld [vmem:[#allocation11 + $0x2d8] sm:$0xff] }
  0x82   :  { %391 = vmatpush1.msra.mxu1 %v328_v42  ;;  %539 = vmatpush1.msra.mxu0 %v499_v23  ;;  %v669_v23 = vld [vmem:[#allocation11 + $0x2d0] sm:$0xff] }
  0x83   :  { %392 = vmatprep.subr.mxu1 %v327_v43  ;;  %540 = vmatprep.subr.mxu0 %v498_v24  ;;  %v668_v24 = vld [vmem:[#allocation11 + $0x2c8] sm:$0xff] }
  0x84   :  { %393 = vmatpush1.msra.mxu1 %v326_v44  ;;  %541 = vmatpush1.msra.mxu0 %v497_v25  ;;  %v667_v25 = vld [vmem:[#allocation11 + $0x2c0] sm:$0xff] }
  0x85   :  { %394 = vmatprep.subr.mxu1 %v325_v45  ;;  %542 = vmatprep.subr.mxu0 %v496_v26  ;;  %v1081_v45 = vld [vmem:[%s1586_s7] ss:$0 sm:$0xff] }
  0x86   :  { %395 = vmatpush1.msra.mxu1 %v324_v46  ;;  %543 = vmatpush1.msra.mxu0 %v495_v27  ;;  %v666_v26 = vld [vmem:[#allocation11 + $0x2b8] sm:$0xff]  ;;  %v665_v27 = vld [vmem:[#allocation11 + $0x2b0] sm:$0xff] }
  0x87   :  { %396 = vmatprep.subr.mxu1 %v323_v47  ;;  %544 = vmatprep.subr.mxu0 %v494_v28  ;;  %v664_v28 = vld [vmem:[#allocation11 + $0x2a8] sm:$0xff] }
  0x88   :  { %397 = vmatpush1.msra.mxu1 %v322_v48  ;;  %545 = vmatpush1.msra.mxu0 %v493_v29  ;;  %v1082_v48 = vld [vmem:[%s1587_s8] ss:$0 sm:$0xff]  ;;  %v663_v29 = vld [vmem:[#allocation11 + $0x2a0] sm:$0xff] }
  0x89   :  { %546 = vmatprep.subr.mxu0 %v492_v30  ;;  %688 = vmatprep.subr.mxu1 %v674_v18  ;;  %v662_v30 = vld [vmem:[#allocation11 + $0x298] sm:$0xff] }
  0x8a   :  { %547 = vmatpush1.msra.mxu0 %v491_v31  ;;  %v661_v31 = vld [vmem:[#allocation11 + $0x290] sm:$0xff] }
  0x8b   :  { %548 = vmatprep.subr.mxu0 %v490_v32  ;;  %v660_v32 = vld [vmem:[#allocation11 + $0x288] sm:$0xff] }
  0x8c   :  { %549 = vmatpush1.msra.mxu0 %v489_v33  ;;  %v659_v33 = vld [vmem:[#allocation11 + $0x280] sm:$0xff] }
  0x8d   :  { %550 = vmatprep.subr.mxu0 %v488_v34  ;;  %v658_v34 = vld [vmem:[#allocation11 + $0x278] sm:$0xff] }
  0x8e   :  { %551 = vmatpush1.msra.mxu0 %v487_v35  ;;  %v657_v35 = vld [vmem:[#allocation11 + $0x270] sm:$0xff] }
  0x8f   :  { %552 = vmatprep.subr.mxu0 %v486_v36  ;;  %v656_v36 = vld [vmem:[#allocation11 + $0x268] sm:$0xff] }
  0x90   :  { %553 = vmatpush1.msra.mxu0 %v485_v37  ;;  %v655_v37 = vld [vmem:[#allocation11 + $0x260] sm:$0xff] }
  0x91   :  { %554 = vmatprep.subr.mxu0 %v484_v38  ;;  %v654_v38 = vld [vmem:[#allocation11 + $0x258] sm:$0xff] }
  0x92   :  { %555 = vmatpush1.msra.mxu0 %v483_v39  ;;  %v653_v39 = vld [vmem:[#allocation11 + $0x250] sm:$0xff] }
  0x93   :  { %556 = vmatprep.subr.mxu0 %v482_v40  ;;  %v652_v40 = vld [vmem:[#allocation11 + $0x248] sm:$0xff] }
  0x94   :  { %557 = vmatpush1.msra.mxu0 %v481_v41  ;;  %v651_v41 = vld [vmem:[#allocation11 + $0x240] sm:$0xff] }
 0x12f   :  { %v228_v52 = vpop.f32.mrf.mxu0 }
 0x131   :  { %v230_v55 = vpop.f32.mrf.mxu0 }
 0x133   :  { %v303_v57 = vpop.f32.mrf.mxu0 }
 0x134   :  { %v304_v58 = vadd.f32 %v303_v57, %v228_v52 }
 0x135   :  { %v305_v60 = vpop.f32.mrf.mxu0 }
 0x136   :  { %v320_v61 = vadd.f32 %v313_v56, %v304_v58  ;;  %v306_v62 = vadd.f32 %v305_v60, %v230_v55 }
 0x138   :  { %v1501_v63 = vadd.f32 %v317_v59, %v306_v62  ;;  %431 = vmatmul.mubr.f32.vlgmr.msra.gmra.mxu1 %v320_v61 }
 0x139   :  { %752 = vmatprep.mubr.f32.mxu1 %v1395_v0  ;;  %689 = vmatpush1.msra.mxu1 %v673_v19 }
 0x13a   :  { %690 = vmatprep.subr.mxu1 %v672_v20 }
 0x13b   :  { %691 = vmatpush1.msra.mxu1 %v671_v21 }
 0x13c   :  { %692 = vmatprep.subr.mxu1 %v670_v22 }
 0x13d   :  { %693 = vmatpush1.msra.mxu1 %v669_v23 }
 0x13e   :  { %694 = vmatprep.subr.mxu1 %v668_v24 }
 0x13f   :  { %695 = vmatpush1.msra.mxu1 %v667_v25 }
 0x140   :  { %696 = vmatprep.subr.mxu1 %v666_v26  ;;  %v836_v26 = vld [vmem:[#allocation11 + $0x3f8] sm:$0xff] }
 0x141   :  { %697 = vmatpush1.msra.mxu1 %v665_v27  ;;  %v835_v27 = vld [vmem:[#allocation11 + $0x3f0] sm:$0xff]  ;;  %850 = vmatprep.subr.mxu0 %v836_v26 }
 0x142   :  { %698 = vmatprep.subr.mxu1 %v664_v28  ;;  %v834_v28 = vld [vmem:[#allocation11 + $0x3e8] sm:$0xff] }
 0x143   :  { %699 = vmatpush1.msra.mxu1 %v663_v29  ;;  %v833_v29 = vld [vmem:[#allocation11 + $0x3e0] sm:$0xff] }
 0x144   :  { %700 = vmatprep.subr.mxu1 %v662_v30  ;;  %v832_v30 = vld [vmem:[#allocation11 + $0x3d8] sm:$0xff] }
 0x145   :  { %701 = vmatpush1.msra.mxu1 %v661_v31  ;;  %v831_v31 = vld [vmem:[#allocation11 + $0x3d0] sm:$0xff] }
 0x146   :  { %702 = vmatprep.subr.mxu1 %v660_v32  ;;  %v830_v32 = vld [vmem:[#allocation11 + $0x3c8] sm:$0xff] }
 0x147   :  { %703 = vmatpush1.msra.mxu1 %v659_v33  ;;  %v829_v33 = vld [vmem:[#allocation11 + $0x3c0] sm:$0xff] }
 0x148   :  { %704 = vmatprep.subr.mxu1 %v658_v34  ;;  %v828_v34 = vld [vmem:[#allocation11 + $0x3b8] sm:$0xff] }
 0x149   :  { %705 = vmatpush1.msra.mxu1 %v657_v35  ;;  %v827_v35 = vld [vmem:[#allocation11 + $0x3b0] sm:$0xff] }
 0x14a   :  { %706 = vmatprep.subr.mxu1 %v656_v36  ;;  %v826_v36 = vld [vmem:[#allocation11 + $0x3a8] sm:$0xff] }
 0x14b   :  { %707 = vmatpush1.msra.mxu1 %v655_v37  ;;  %v825_v37 = vld [vmem:[#allocation11 + $0x3a0] sm:$0xff] }
 0x14c   :  { %708 = vmatprep.subr.mxu1 %v654_v38  ;;  %v824_v38 = vld [vmem:[#allocation11 + $0x398] sm:$0xff] }
 0x14d   :  { %709 = vmatpush1.msra.mxu1 %v653_v39  ;;  %v823_v39 = vld [vmem:[#allocation11 + $0x390] sm:$0xff] }
 0x14e   :  { %710 = vmatprep.subr.mxu1 %v652_v40  ;;  %v822_v40 = vld [vmem:[#allocation11 + $0x388] sm:$0xff] }
 0x14f   :  { %711 = vmatpush1.msra.mxu1 %v651_v41  ;;  %v821_v41 = vld [vmem:[#allocation11 + $0x380] sm:$0xff] }
 0x1f8   :  { %v432_v4 = vpop.f32.mrf.mxu1 }
 0x1f9   :  { %v433_v6 = vadd.f32 %v432_v4, %v359_v2 }
 0x1fa   :  { %v434_v5 = vpop.f32.mrf.mxu1 }
 0x1fb   :  { %v435_v7 = vadd.f32 %v434_v5, %v363_v3 }
 0x1fd   :  { %v1506_v8 = vsub.f32 %v433_v6, %v435_v7 }
 0x1ff   :  { %v438_v9 = vmul.f32 %v1506_v8, %v1506_v8 }
 0x201   :  { %439 = vadd.xlane.f32.xlu0 %v438_v9  ;;  %v514_v9 = vld [vmem:[#allocation13 + $0x2] sm:$0x3] }
 0x202   :  { %v519_v10 = vrot.slane %v514_v9, %v1495_v51  ;;  %v523_v11 = vrot.slane %v514_v9, %v1497_v54 }
 0x28a   :  { %v440_v42 = vpop.xlane.xlu0 %439 }
 0x28b   :  { %v441_v43 = vmul.f32 0.0078125, %v440_v42  ;;  %v650_v42 = vld [vmem:[#allocation11 + $0x238] sm:$0xff] }
 0x28c   :  { %712 = vmatprep.subr.mxu1 %v650_v42  ;;  %v820_v42 = vld [vmem:[#allocation11 + $0x378] sm:$0xff] }
 0x28d   :  { %v442_v44 = vadd.f32 1e-05, %v441_v43  ;;  %v649_v43 = vld [vmem:[#allocation11 + $0x230] sm:$0xff] }
 0x28e   :  { %713 = vmatpush1.msra.mxu1 %v649_v43  ;;  %v819_v43 = vld [vmem:[#allocation11 + $0x370] sm:$0xff] }
 0x28f   :  { %1165 = vrsqrt.f32 %v442_v44  ;;  %v648_v44 = vld [vmem:[#allocation11 + $0x228] sm:$0xff] }
 0x290   :  { %714 = vmatprep.subr.mxu1 %v648_v44  ;;  %v818_v44 = vld [vmem:[#allocation11 + $0x368] sm:$0xff] }
 0x29c   :  { %v1166_v46 = vpop.eup %1165 }
 0x29d   :  { %v451_v47 = vmul.f32 %v1166_v46, %v1081_v45  ;;  %v647_v45 = vld [vmem:[#allocation11 + $0x220] sm:$0xff]  ;;  %v646_v46 = vld [vmem:[#allocation11 + $0x218] sm:$0xff] }
 0x29e   :  { %715 = vmatpush1.msra.mxu1 %v647_v45  ;;  %v817_v45 = vld [vmem:[#allocation11 + $0x360] sm:$0xff] }
 0x29f   :  { %v452_v49 = vmul.f32 %v451_v47, %v1506_v8  ;;  %v645_v47 = vld [vmem:[#allocation11 + $0x210] sm:$0xff]  ;;  %716 = vmatprep.subr.mxu1 %v646_v46  ;;  %v816_v46 = vld [vmem:[#allocation11 + $0x358] sm:$0xff] }
 0x2a0   :  { %717 = vmatpush1.msra.mxu1 %v645_v47  ;;  %v815_v47 = vld [vmem:[#allocation11 + $0x350] sm:$0xff] }
 0x2a1   :  { %v460_v50 = vadd.f32 %v1082_v48, %v452_v49  ;;  %v644_v48 = vld [vmem:[#allocation11 + $0x208] sm:$0xff]  ;;  %v643_v49 = vld [vmem:[#allocation11 + $0x200] sm:$0xff] }
 0x2a2   :  { %718 = vmatprep.subr.mxu1 %v644_v48  ;;  %v814_v48 = vld [vmem:[#allocation11 + $0x348] sm:$0xff] }
 0x2a3   :  { %v461_v52 = vand.u32 2147483647, %v460_v50  ;;  %vm466_vm2 = vcmp.ge.f32.partialorder %v460_v50, 0.0  ;;  %719 = vmatpush1.msra.mxu1 %v643_v49  ;;  %v813_v49 = vld [vmem:[#allocation11 + $0x340] sm:$0xff] }
 0x2a4   :  { %1113 = vmatprep.subr.mxu1 %v1395_v0 }
 0x2a5   :  { %v462_v53 = vsub.f32 0.0, %v461_v52 }
 0x2a7   :  { %v463_v55 = vmul.f32 1.442695, %v462_v53 }
 0x2a9   :  { %1167 = vpow2.f32 %v463_v55  ;;  %v1084_v55 = vld [vmem:[%s1586_s7 + $0x1] ss:$0 sm:$0xff] }
 0x2b6   :  { %v1168_v56 = vpop.eup %1167 }
 0x2b7   :  { %v465_v57 = vmul.f32 %v1168_v56, %v1168_v56  ;;  %v467_v58 = vmul.f32 2.0, %v1168_v56 }
 0x2b9   :  { %v469_v59 = vadd.f32 %v467_v58, %v465_v57  ;;  %v471_v60 = vmul.f32 2.0, %v465_v57  ;;  %v468_v3 = vadd.f32 1.0, %v467_v58 }
 0x2bb   :  { %v472_v61 = vadd.f32 %v471_v60, %v467_v58  ;;  %v474_v1 = vadd.f32 2.0, %v469_v59  ;;  %v470_v4 = vsel %vm466_vm2, %v468_v3, %v469_v59  ;;  %v1086_v58 = vld [vmem:[%s1587_s8 + $0x1] ss:$0 sm:$0xff] }
 0x2bc   :  { %v476_v5 = vmul.f32 %v470_v4, %v460_v50 }
 0x2bd   :  { %v473_v62 = vadd.f32 1.0, %v472_v61 }
 0x2bf   :  { %v475_v2 = vsel %vm466_vm2, %v473_v62, %v474_v1 }
 0x2c0   :  { %1169 = vrcp.f32 %v475_v2 }
 0x2cd   :  { %v1170_v6 = vpop.eup %1169 }
 0x2ce   :  { %v478_v7 = vmul.f32 %v1170_v6, %v476_v5 }
 0x2d0   :  { %v479_v8 = vadd.f32 %v478_v7, %v1501_v63 }
 0x2d2   :  { %591 = vmatmul.mubr.f32.vlgmr.msra.gmra.mxu0 %v479_v8 }
 0x2d3   :  { %914 = vmatprep.mubr.f32.mxu0 %v1395_v0  ;;  %851 = vmatpush1.msra.mxu0 %v835_v27 }
 0x2d4   :  { %852 = vmatprep.subr.mxu0 %v834_v28 }
 0x2d5   :  { %853 = vmatpush1.msra.mxu0 %v833_v29 }
 0x2d6   :  { %854 = vmatprep.subr.mxu0 %v832_v30 }
 0x2d7   :  { %855 = vmatpush1.msra.mxu0 %v831_v31 }
 0x2d8   :  { %856 = vmatprep.subr.mxu0 %v830_v32 }
 0x2d9   :  { %857 = vmatpush1.msra.mxu0 %v829_v33 }
 0x2da   :  { %858 = vmatprep.subr.mxu0 %v828_v34  ;;  %v981_v34 = vld [vmem:[#allocation14 + $0x78] sm:$0xff] }
 0x2db   :  { %859 = vmatpush1.msra.mxu0 %v827_v35  ;;  %v980_v35 = vld [vmem:[#allocation14 + $0x70] sm:$0xff] }
 0x2dc   :  { %860 = vmatprep.subr.mxu0 %v826_v36  ;;  %v979_v36 = vld [vmem:[#allocation14 + $0x68] sm:$0xff] }
 0x2dd   :  { %861 = vmatpush1.msra.mxu0 %v825_v37  ;;  %v976_v37 = vld [vmem:[#allocation14 + $0x50] sm:$0xff] }
 0x2de   :  { %862 = vmatprep.subr.mxu0 %v824_v38  ;;  %v975_v38 = vld [vmem:[#allocation14 + $0x48] sm:$0xff] }
 0x2df   :  { %863 = vmatpush1.msra.mxu0 %v823_v39  ;;  %v974_v39 = vld [vmem:[#allocation14 + $0x40] sm:$0xff] }
 0x2e0   :  { %864 = vmatprep.subr.mxu0 %v822_v40  ;;  %v973_v40 = vld [vmem:[#allocation14 + $0x38] sm:$0xff] }
 0x2e1   :  { %865 = vmatpush1.msra.mxu0 %v821_v41  ;;  %v972_v41 = vld [vmem:[#allocation14 + $0x30] sm:$0xff] }
 0x2e2   :  { %866 = vmatprep.subr.mxu0 %v820_v42  ;;  %v971_v42 = vld [vmem:[#allocation14 + $0x28] sm:$0xff] }
 0x2e3   :  { %867 = vmatpush1.msra.mxu0 %v819_v43  ;;  %v970_v43 = vld [vmem:[#allocation14 + $0x20] sm:$0xff] }
 0x2e4   :  { %868 = vmatprep.subr.mxu0 %v818_v44  ;;  %v969_v44 = vld [vmem:[#allocation14 + $0x18] sm:$0xff] }
 0x2e5   :  { %869 = vmatpush1.msra.mxu0 %v817_v45  ;;  %v968_v45 = vld [vmem:[#allocation14 + $0x10] sm:$0xff] }
 0x2e6   :  { %870 = vmatprep.subr.mxu0 %v816_v46  ;;  %v967_v46 = vld [vmem:[#allocation14 + $0x8] sm:$0xff] }
 0x2e7   :  { %871 = vmatpush1.msra.mxu0 %v815_v47  ;;  %v966_v47 = vld [vmem:[#allocation14] sm:$0xff] }
 0x2e8   :  { %872 = vmatprep.subr.mxu0 %v814_v48 }
 0x2e9   :  { %873 = vmatpush1.msra.mxu0 %v813_v49 }
 0x392   :  { %v592_v12 = vpop.f32.mrf.mxu0 }
 0x393   :  { %v593_v14 = vadd.f32 %v592_v12, %v519_v10 }
 0x394   :  { %v594_v13 = vpop.f32.mrf.mxu0 }
 0x395   :  { %v595_v15 = vadd.f32 %v594_v13, %v523_v11 }
 0x397   :  { %v1521_v16 = vsub.f32 %v593_v14, %v595_v15 }
 0x399   :  { %v598_v17 = vmul.f32 %v1521_v16, %v1521_v16 }
 0x39b   :  { %599 = vadd.xlane.f32.xlu0 %v598_v17  ;;  %v676_v17 = vld [vmem:[#allocation13 + $0x4] sm:$0x3] }
 0x39c   :  { %v681_v18 = vrot.slane %v676_v17, %v1495_v51  ;;  %v685_v19 = vrot.slane %v676_v17, %v1497_v54 }
 0x424   :  { %v600_v50 = vpop.xlane.xlu0 %599 }
 0x425   :  { %v601_v52 = vmul.f32 0.0078125, %v600_v50  ;;  %v812_v50 = vld [vmem:[#allocation11 + $0x338] sm:$0xff] }
 0x426   :  { %874 = vmatprep.subr.mxu0 %v812_v50 }
 0x427   :  { %v602_v53 = vadd.f32 1e-05, %v601_v52  ;;  %v811_v52 = vld [vmem:[#allocation11 + $0x330] sm:$0xff] }
 0x428   :  { %875 = vmatpush1.msra.mxu0 %v811_v52  ;;  %v1092_v52 = vld [vmem:[%s1586_s7 + $0x3] ss:$0 sm:$0xff] }
 0x429   :  { %1171 = vrsqrt.f32 %v602_v53  ;;  %v810_v53 = vld [vmem:[#allocation11 + $0x328] sm:$0xff] }
 0x42a   :  { %876 = vmatprep.subr.mxu0 %v810_v53 }
 0x436   :  { %v1172_v56 = vpop.eup %1171 }
 0x437   :  { %v612_v57 = vmul.f32 %v1172_v56, %v1084_v55  ;;  %v809_v55 = vld [vmem:[#allocation11 + $0x320] sm:$0xff]  ;;  %v808_v56 = vld [vmem:[#allocation11 + $0x318] sm:$0xff] }
 0x438   :  { %877 = vmatpush1.msra.mxu0 %v809_v55 }
 0x439   :  { %v613_v59 = vmul.f32 %v612_v57, %v1521_v16  ;;  %v807_v57 = vld [vmem:[#allocation11 + $0x310] sm:$0xff]  ;;  %878 = vmatprep.subr.mxu0 %v808_v56  ;;  %v1094_v56 = vld [vmem:[%s1587_s8 + $0x3] ss:$0 sm:$0xff] }
 0x43a   :  { %879 = vmatpush1.msra.mxu0 %v807_v57 }
 0x43b   :  { %v622_v60 = vadd.f32 %v1086_v58, %v613_v59  ;;  %v806_v58 = vld [vmem:[#allocation11 + $0x308] sm:$0xff]  ;;  %v805_v59 = vld [vmem:[#allocation11 + $0x300] sm:$0xff] }
 0x43c   :  { %880 = vmatprep.subr.mxu0 %v806_v58 }
 0x43d   :  { %v623_v61 = vand.u32 2147483647, %v622_v60  ;;  %vm628_vm3 = vcmp.ge.f32.partialorder %v622_v60, 0.0  ;;  %881 = vmatpush1.msra.mxu0 %v805_v59 }
 0x43f   :  { %v624_v62 = vsub.f32 0.0, %v623_v61 }
 0x441   :  { %v625_v1 = vmul.f32 1.442695, %v624_v62 }
 0x443   :  { %1173 = vpow2.f32 %v625_v1  ;;  %v1088_v1 = vld [vmem:[%s1586_s7 + $0x2] ss:$0 sm:$0xff] }
 0x450   :  { %v1174_v2 = vpop.eup %1173 }
 0x451   :  { %v627_v3 = vmul.f32 %v1174_v2, %v1174_v2  ;;  %v629_v4 = vmul.f32 2.0, %v1174_v2 }
 0x453   :  { %v631_v5 = vadd.f32 %v629_v4, %v627_v3  ;;  %v633_v6 = vmul.f32 2.0, %v627_v3  ;;  %v630_v11 = vadd.f32 1.0, %v629_v4 }
 0x455   :  { %v634_v7 = vadd.f32 %v633_v6, %v629_v4  ;;  %v636_v9 = vadd.f32 2.0, %v631_v5  ;;  %v632_v12 = vsel %vm628_vm3, %v630_v11, %v631_v5  ;;  %v1090_v4 = vld [vmem:[%s1587_s8 + $0x2] ss:$0 sm:$0xff] }
 0x456   :  { %v638_v13 = vmul.f32 %v632_v12, %v622_v60 }
 0x457   :  { %v635_v8 = vadd.f32 1.0, %v634_v7 }
 0x459   :  { %v637_v10 = vsel %vm628_vm3, %v635_v8, %v636_v9 }
 0x45a   :  { %1175 = vrcp.f32 %v637_v10 }
 0x467   :  { %v1176_v14 = vpop.eup %1175 }
 0x468   :  { %v640_v15 = vmul.f32 %v1176_v14, %v638_v13 }
 0x46a   :  { %v641_v16 = vadd.f32 %v640_v15, %v1501_v63 }
 0x46c   :  { %753 = vmatmul.mubr.f32.vlgmr.msra.gmra.mxu1 %v641_v16 }
 0x46d   :  { %1114 = vmatpush3.msra.mxu1 %v981_v34  ;;  %1145 = vmatprep.mubr.msk.f32.mxu1 %vm1396_vm5, %v1395_v0 }
 0x46e   :  { %1115 = vmatprep.subr.mxu1 %v1395_v0 }
 0x46f   :  { %1116 = vmatpush3.msra.mxu1 %v980_v35 }
 0x470   :  { %1117 = vmatprep.subr.mxu1 %v1395_v0 }
 0x471   :  { %1118 = vmatpush3.msra.mxu1 %v979_v36 }
 0x472   :  { %1119 = vmatprep.subr.mxu1 %v1395_v0 }
 0x52c   :  { %v754_v20 = vpop.f32.mrf.mxu1 }
 0x52d   :  { %v755_v22 = vadd.f32 %v754_v20, %v681_v18 }
 0x52e   :  { %v756_v21 = vpop.f32.mrf.mxu1 }
 0x52f   :  { %v757_v23 = vadd.f32 %v756_v21, %v685_v19 }
 0x531   :  { %v1536_v24 = vsub.f32 %v755_v22, %v757_v23 }
 0x533   :  { %v760_v25 = vmul.f32 %v1536_v24, %v1536_v24 }
 0x535   :  { %761 = vadd.xlane.f32.xlu1 %v760_v25  ;;  %v838_v25 = vld [vmem:[#allocation13 + $0x6] sm:$0x3] }
 0x536   :  { %v843_v26 = vrot.slane %v838_v25, %v1495_v51  ;;  %v847_v27 = vrot.slane %v838_v25, %v1497_v54  ;;  %v978_v51 = vld [vmem:[#allocation14 + $0x60] sm:$0xff]  ;;  %v977_v54 = vld [vmem:[#allocation14 + $0x58] sm:$0xff] }
 0x537   :  { %1120 = vmatpush3.msra.mxu1 %v978_v51 }
 0x538   :  { %1121 = vmatprep.subr.mxu1 %v1395_v0 }
 0x539   :  { %1122 = vmatpush3.msra.mxu1 %v977_v54 }
 0x53a   :  { %1123 = vmatprep.subr.mxu1 %v1395_v0 }
 0x53b   :  { %1124 = vmatpush3.msra.mxu1 %v976_v37 }
 0x53c   :  { %1125 = vmatprep.subr.mxu1 %v1395_v0 }
 0x53d   :  { %1126 = vmatpush3.msra.mxu1 %v975_v38 }
 0x53e   :  { %1127 = vmatprep.subr.mxu1 %v1395_v0 }
 0x53f   :  { %1128 = vmatpush3.msra.mxu1 %v974_v39 }
 0x540   :  { %1129 = vmatprep.subr.mxu1 %v1395_v0 }
 0x541   :  { %1130 = vmatpush3.msra.mxu1 %v973_v40 }
 0x542   :  { %1131 = vmatprep.subr.mxu1 %v1395_v0 }
 0x543   :  { %1132 = vmatpush3.msra.mxu1 %v972_v41 }
 0x544   :  { %1133 = vmatprep.subr.mxu1 %v1395_v0 }
 0x545   :  { %1134 = vmatpush3.msra.mxu1 %v971_v42 }
 0x546   :  { %1135 = vmatprep.subr.mxu1 %v1395_v0 }
 0x547   :  { %1136 = vmatpush3.msra.mxu1 %v970_v43 }
 0x548   :  { %1137 = vmatprep.subr.mxu1 %v1395_v0 }
 0x549   :  { %1138 = vmatpush3.msra.mxu1 %v969_v44 }
 0x54a   :  { %1139 = vmatprep.subr.mxu1 %v1395_v0 }
 0x54b   :  { %1140 = vmatpush3.msra.mxu1 %v968_v45 }
 0x54c   :  { %1141 = vmatprep.subr.mxu1 %v1395_v0 }
 0x54d   :  { %1142 = vmatpush3.msra.mxu1 %v967_v46 }
 0x54e   :  { %1143 = vmatprep.subr.mxu1 %v1395_v0 }
 0x54f   :  { %1144 = vmatpush3.msra.mxu1 %v966_v47 }
 0x5be   :  { %v762_v60 = vpop.xlane.xlu1 %761 }
 0x5bf   :  { %v763_v61 = vmul.f32 0.0078125, %v762_v60 }
 0x5c1   :  { %v764_v62 = vadd.f32 1e-05, %v763_v61 }
 0x5c3   :  { %1177 = vrsqrt.f32 %v764_v62 }
 0x5d0   :  { %v1178_v2 = vpop.eup %1177 }
 0x5d1   :  { %v774_v3 = vmul.f32 %v1178_v2, %v1088_v1 }
 0x5d3   :  { %v775_v5 = vmul.f32 %v774_v3, %v1536_v24 }
 0x5d5   :  { %v784_v6 = vadd.f32 %v1090_v4, %v775_v5 }
 0x5d7   :  { %v785_v7 = vand.u32 2147483647, %v784_v6  ;;  %vm790_vm4 = vcmp.ge.f32.partialorder %v784_v6, 0.0 }
 0x5d9   :  { %v786_v8 = vsub.f32 0.0, %v785_v7 }
 0x5db   :  { %v787_v9 = vmul.f32 1.442695, %v786_v8 }
 0x5dd   :  { %1179 = vpow2.f32 %v787_v9 }
 0x5ea   :  { %v1180_v10 = vpop.eup %1179 }
 0x5eb   :  { %v789_v11 = vmul.f32 %v1180_v10, %v1180_v10  ;;  %v791_v12 = vmul.f32 2.0, %v1180_v10 }
 0x5ed   :  { %v793_v13 = vadd.f32 %v791_v12, %v789_v11  ;;  %v795_v14 = vmul.f32 2.0, %v789_v11  ;;  %v792_v19 = vadd.f32 1.0, %v791_v12 }
 0x5ef   :  { %v796_v15 = vadd.f32 %v795_v14, %v791_v12  ;;  %v798_v17 = vadd.f32 2.0, %v793_v13  ;;  %v794_v20 = vsel %vm790_vm4, %v792_v19, %v793_v13  ;;  %v1095_v14 = vld [vmem:[%s1589_s10] ss:$0 sm:$0xff] }
 0x5f0   :  { %v800_v21 = vmul.f32 %v794_v20, %v784_v6 }
 0x5f1   :  { %v797_v16 = vadd.f32 1.0, %v796_v15 }
 0x5f3   :  { %v799_v18 = vsel %vm790_vm4, %v797_v16, %v798_v17 }
 0x5f4   :  { %1181 = vrcp.f32 %v799_v18 }
 0x601   :  { %v1182_v22 = vpop.eup %1181 }
 0x602   :  { %v802_v23 = vmul.f32 %v1182_v22, %v800_v21 }
 0x604   :  { %v803_v24 = vadd.f32 %v802_v23, %v1501_v63 }
 0x606   :  { %915 = vmatmul.mubr.f32.vlgmr.msra.gmra.mxu0 %v803_v24 }
 0x6c6   :  { %v916_v28 = vpop.f32.mrf.mxu0 }
 0x6c7   :  { %v917_v30 = vadd.f32 %v916_v28, %v843_v26 }
 0x6c8   :  { %v918_v29 = vpop.f32.mrf.mxu0 }
 0x6c9   :  { %v919_v31 = vadd.f32 %v918_v29, %v847_v27 }
 0x6cb   :  { %v921_v32 = vsub.f32 %v917_v30, %v919_v31 }
 0x6cd   :  { %v922_v33 = vmul.f32 %v921_v32, %v921_v32 }
 0x6cf   :  { %923 = vadd.xlane.f32.xlu1 %v922_v33 }
 0x758   :  { %v924_v48 = vpop.xlane.xlu1 %923 }
 0x759   :  { %v925_v49 = vmul.f32 0.0078125, %v924_v48 }
 0x75b   :  { %v926_v50 = vadd.f32 1e-05, %v925_v49 }
 0x75d   :  { %1183 = vrsqrt.f32 %v926_v50 }
 0x76a   :  { %v1184_v53 = vpop.eup %1183 }
 0x76b   :  { %v936_v55 = vmul.f32 %v1184_v53, %v1092_v52 }
 0x76d   :  { %v937_v57 = vmul.f32 %v936_v55, %v921_v32 }
 0x76f   :  { %v946_v58 = vadd.f32 %v1094_v56, %v937_v57 }
 0x771   :  { %v947_v59 = vand.u32 2147483647, %v946_v58  ;;  %vm952_vm6 = vcmp.ge.f32.partialorder %v946_v58, 0.0 }
 0x773   :  { %v948_v60 = vsub.f32 0.0, %v947_v59 }
 0x775   :  { %v949_v0 = vmul.f32 1.442695, %v948_v60 }
 0x777   :  { %1185 = vpow2.f32 %v949_v0 }
 0x784   :  { %v1186_v61 = vpop.eup %1185 }
 0x785   :  { %v951_v62 = vmul.f32 %v1186_v61, %v1186_v61  ;;  %v953_v1 = vmul.f32 2.0, %v1186_v61 }
 0x787   :  { %v955_v2 = vadd.f32 %v953_v1, %v951_v62  ;;  %v957_v3 = vmul.f32 2.0, %v951_v62  ;;  %v954_v8 = vadd.f32 1.0, %v953_v1 }
 0x789   :  { %v958_v4 = vadd.f32 %v957_v3, %v953_v1  ;;  %v960_v6 = vadd.f32 2.0, %v955_v2  ;;  %v956_v9 = vsel %vm952_vm6, %v954_v8, %v955_v2 }
 0x78a   :  { %v962_v10 = vmul.f32 %v956_v9, %v946_v58 }
 0x78b   :  { %v959_v5 = vadd.f32 1.0, %v958_v4 }
 0x78d   :  { %v961_v7 = vsel %vm952_vm6, %v959_v5, %v960_v6 }
 0x78e   :  { %1187 = vrcp.f32 %v961_v7 }
 0x79b   :  { %v1188_v11 = vpop.eup %1187 }
 0x79c   :  { %v964_v12 = vmul.f32 %v1188_v11, %v962_v10 }
 0x79e   :  { %v965_v13 = vadd.f32 %v964_v12, %v1501_v63 }
 0x7a0   :  { %1146 = vmatmul.mubr.f32.vlgmr.msra.gmra.mxu1 %v965_v13 }
 0x860   :  { %v1055_v15 = vpop.f32.mrf.mxu1 }
 0x861   :  { %v1056_v16 = vadd.f32 %v1095_v14, %v1055_v15 }
 0x862   :  { %v1147_v17 = vpop.f32.mrf.mxu1 }
 0x863   :  { %1059 = vst [vmem:[#allocation16] sm:$0xff] %v1056_v16 }
 0x864   :  { %1360 = shalt.err (!%p1357_p2)
}
 0x865   :  { %1069 = dma.vmem_to_hbm [thread:$0]  %s1067_s27, 128, %s1590_s11, [#allocation4]  }
 0x866   :  { %1379 = dma.done.wait [#allocation4], 128  }
 0x867   :  { %1380 = vsyncadd [#allocation4], 4294967168 }
 0x868   :  { %1073 = vsyncpa [#allocation3], 1 }
 0x869   :  { %1074 = vsyncpa [#allocation6], 1 }
 0x86a   :  { %1075 = vsyncpa [#allocation9], 1 }
 0x86b   :  { %1076 = vsyncpa [#allocation12], 1 }
 0x86c   :  { %1077 = vsyncpa [#allocation15], 1 }
 0x86d   :  { %1078 = vsyncpa [#allocation4], 1 }

</bundles_post_ra>
